<compile_context>
chip_gen: v7x
topology: tpu7x:2x2x1
jax: 0.10.0
libtpu: 0.0.40
codegen_flags: <defaults>
</compile_context>

<pallas_src>
import functools

import jax
import jax.numpy as jnp
from jax.experimental import pallas as pl
from jax.experimental.pallas import tpu as pltpu


def _round_up(v, m):
    return -(-v // m) * m


_TK_MAX = 2048      # single-K (no-scratch) kernel whenever Kp <= this


def _pick_tm(mp):
    """Largest row tile (multiple of 16, <= 256) that yields >= 2 blocks when possible."""
    for tm in (256, 128, 64, 32, 16):
        if tm < mp and mp % tm == 0:
            return tm
    return mp


# -----------------------------------------------------------------------------
# Pallas kernels
# -----------------------------------------------------------------------------
def _matmul_act_kernel(x_ref, w_ref, b_ref, o_ref, *, activation):
    """Single-K-block fused matmul: o = act(x @ w + b); no accumulator scratch."""
    acc = jnp.dot(x_ref[...], w_ref[...], preferred_element_type=jnp.float32)
    acc = acc + b_ref[...]                     # folded conv bias + BN shift
    if activation == "leaky_relu":
        acc = jnp.where(acc >= 0.0, acc, 0.01 * acc)     # nn.LeakyReLU default
    elif activation == "tanh":
        acc = jnp.tanh(acc)
    o_ref[...] = acc.astype(o_ref.dtype)


def _matmul_act_acc_kernel(x_ref, w_ref, b_ref, o_ref, acc_ref, *, activation):
    """Multi-K fallback: f32 VMEM accumulator, epilogue on last K step."""
    k = pl.program_id(1)

    @pl.when(k == 0)
    def _():
        acc_ref[...] = jnp.zeros_like(acc_ref)

    acc_ref[...] += jnp.dot(x_ref[...], w_ref[...],
                            preferred_element_type=jnp.float32)

    @pl.when(k == pl.num_programs(1) - 1)
    def _():
        acc = acc_ref[...] + b_ref[...]
        if activation == "leaky_relu":
            acc = jnp.where(acc >= 0.0, acc, 0.01 * acc)
        elif activation == "tanh":
            acc = jnp.tanh(acc)
        o_ref[...] = acc.astype(o_ref.dtype)


def fused_matmul(x, layer, n_out, activation="none", out_dtype=jnp.bfloat16):
    """out = activation(x @ W + b) with pre-folded W:(Kp,Np) bf16, b:(1,Np) f32.

    x: (M, K) with K <= Kp.  Returns (M, n_out) in out_dtype.
    """
    M, K = x.shape
    Kp, Np = layer["w"].shape
    Mp = _round_up(M, 16)                      # bf16 packs 2 rows / sublane
    TM = _pick_tm(Mp)
    xp = x
    if (Mp, Kp) != (M, K):
        xp = jnp.pad(x, ((0, Mp - M), (0, Kp - K)))
    xp = xp.astype(jnp.bfloat16)

    if Kp <= _TK_MAX:                          # every layer in this config
        out = pl.pallas_call(
            functools.partial(_matmul_act_kernel, activation=activation),
            out_shape=jax.ShapeDtypeStruct((Mp, Np), out_dtype),
            grid_spec=pltpu.PrefetchScalarGridSpec(
                num_scalar_prefetch=0,
                grid=(Mp // TM,),
                in_specs=[
                    pl.BlockSpec((TM, Kp), lambda i: (i, 0)),
                    pl.BlockSpec((Kp, Np), lambda i: (0, 0)),
                    pl.BlockSpec((1, Np), lambda i: (0, 0)),
                ],
                out_specs=pl.BlockSpec((TM, Np), lambda i: (i, 0)),
            ),
            compiler_params=pltpu.CompilerParams(
                dimension_semantics=("parallel",)),
        )(xp, layer["w"], layer["b"])
    else:
        TK = 512
        out = pl.pallas_call(
            functools.partial(_matmul_act_acc_kernel, activation=activation),
            out_shape=jax.ShapeDtypeStruct((Mp, Np), out_dtype),
            grid_spec=pltpu.PrefetchScalarGridSpec(
                num_scalar_prefetch=0,
                grid=(Mp // TM, Kp // TK),
                in_specs=[
                    pl.BlockSpec((TM, TK), lambda i, k: (i, k)),
                    pl.BlockSpec((TK, Np), lambda i, k: (k, 0)),
                    pl.BlockSpec((1, Np), lambda i, k: (0, 0)),
                ],
                out_specs=pl.BlockSpec((TM, Np), lambda i, k: (i, 0)),
                scratch_shapes=[pltpu.VMEM((TM, Np), jnp.float32)],
            ),
            compiler_params=pltpu.CompilerParams(
                dimension_semantics=("parallel", "arbitrary")),
        )(xp, layer["w"], layer["b"])
    return out[:M, :n_out]


def _latent_head_kernel(x_ref, w_ref, b_ref, eps_ref, wd_ref, bd_ref,
                        mu_ref, lv_ref, z_ref, d_ref, *, dp):
    """[fc_mu|fc_var] matmul + reparametrization + decoder_input matmul fused."""
    acc = jnp.dot(x_ref[...], w_ref[...], preferred_element_type=jnp.float32)
    acc = acc + b_ref[...]
    mu = acc[:, :dp]
    lv = acc[:, dp:]
    z = eps_ref[...] * jnp.exp(0.5 * lv) + mu
    mu_ref[...] = mu
    lv_ref[...] = lv
    z_ref[...] = z
    d = jnp.dot(z.astype(jnp.bfloat16), wd_ref[...],
                preferred_element_type=jnp.float32) + bd_ref[...]
    d_ref[...] = d.astype(d_ref.dtype)


def latent_head(x_flat_nhwc, head, eps, latent_dim, mid_dim):
    """Returns (mu, log_var, z) f32 (B, latent_dim) and decoder input (B, mid_dim) bf16."""
    B, K = x_flat_nhwc.shape
    Kp, N2 = head["w"].shape
    Dp = N2 // 2
    Npd = head["wd"].shape[1]
    Mp = _round_up(max(B, 16), 16)
    x = jnp.pad(x_flat_nhwc, ((0, Mp - B), (0, Kp - K))).astype(jnp.bfloat16)
    epsp = jnp.pad(eps, ((0, Mp - B), (0, Dp - latent_dim))).astype(jnp.float32)
    mu, lv, z, d = pl.pallas_call(
        functools.partial(_latent_head_kernel, dp=Dp),
        out_shape=(jax.ShapeDtypeStruct((Mp, Dp), jnp.float32),
                   jax.ShapeDtypeStruct((Mp, Dp), jnp.float32),
                   jax.ShapeDtypeStruct((Mp, Dp), jnp.float32),
                   jax.ShapeDtypeStruct((Mp, Npd), jnp.bfloat16)),
        grid_spec=pltpu.PrefetchScalarGridSpec(
            num_scalar_prefetch=0,
            grid=(1,),
            in_specs=[
                pl.BlockSpec((Mp, Kp), lambda i: (0, 0)),
                pl.BlockSpec((Kp, N2), lambda i: (0, 0)),
                pl.BlockSpec((1, N2), lambda i: (0, 0)),
                pl.BlockSpec((Mp, Dp), lambda i: (0, 0)),
                pl.BlockSpec((Dp, Npd), lambda i: (0, 0)),
                pl.BlockSpec((1, Npd), lambda i: (0, 0)),
            ],
            out_specs=[pl.BlockSpec((Mp, Dp), lambda i: (0, 0))] * 3
                      + [pl.BlockSpec((Mp, Npd), lambda i: (0, 0))],
        ),
    )(x, head["w"], head["b"], epsp, head["wd"], head["bd"])
    return (mu[:B, :latent_dim], lv[:B, :latent_dim], z[:B, :latent_dim],
            d[:B, :mid_dim])


# -----------------------------------------------------------------------------
# NHWC im2col + conv wrappers (tiny XLA glue, fused under one jit)
# -----------------------------------------------------------------------------
def _im2col_nhwc(x, kh, kw, stride, padding):
    """x: (N,H,W,C) -> patches (N*Ho*Wo, kh*kw*C) with K ordered (dh, dw, c)."""
    N, H, W, C = x.shape
    if padding:
        x = jnp.pad(x, ((0, 0), (padding, padding), (padding, padding), (0, 0)))
    Hp, Wp = H + 2 * padding, W + 2 * padding
    Ho = (Hp - kh) // stride + 1
    Wo = (Wp - kw) // stride + 1
    cols = []
    for dh in range(kh):
        for dw in range(kw):
            cols.append(x[:, dh:dh + (Ho - 1) * stride + 1:stride,
                             dw:dw + (Wo - 1) * stride + 1:stride, :])
    patches = jnp.concatenate(cols, axis=-1)
    return patches.reshape(N * Ho * Wo, kh * kw * C), Ho, Wo


def conv2d_fused(x, layer, cout, kh, kw, stride, padding, activation,
                 out_dtype=jnp.bfloat16):
    """Conv2d(+folded BN)+activation.  x NHWC -> NHWC."""
    N = x.shape[0]
    patches, Ho, Wo = _im2col_nhwc(x, kh, kw, stride, padding)
    out = fused_matmul(patches, layer, cout, activation, out_dtype)
    return out.reshape(N, Ho, Wo, cout)


def conv_transpose2d_fused(x, layer, cout, activation, out_dtype=jnp.bfloat16):
    """ConvTranspose2d(3x3, stride=2, pad=1, out_pad=1)(+folded BN)+activation.

    Stride^2 sub-kernel decomposition: one 2x2-patch matmul with N = 4*Cout
    (one column block per output parity class) then a pixel-shuffle interleave.
    x NHWC (N,H,W,Cin) -> (N,2H,2W,Cout).
    """
    N, H, W, _ = x.shape
    xp = jnp.pad(x, ((0, 0), (0, 1), (0, 1), (0, 0)))        # taps at q+1 / r+1
    patches, _, _ = _im2col_nhwc(xp, 2, 2, 1, 0)             # Ho == H, Wo == W
    out = fused_matmul(patches, layer, 4 * cout, activation, out_dtype)
    out = out.reshape(N, H, W, 2, 2, cout).transpose(0, 1, 3, 2, 4, 5)
    return out.reshape(N, 2 * H, 2 * W, cout)


# -----------------------------------------------------------------------------
# One-time parameter folding (BN fold, layout, permute, padding, bf16 cast)
# -----------------------------------------------------------------------------
def _bn_scale_shift(p, eps=1e-5):
    s = p["gamma"] / jnp.sqrt(p["var"] + eps)
    return s, p["beta"] - p["mean"] * s


def _pad_matmul_operands(w2, b2):
    """w2: (K, N) f32, b2: (N,) f32 -> {w: (Kp,Np) bf16, b: (1,Np) f32}."""
    K, N = w2.shape
    Kp = _round_up(K, 128)
    if Kp > _TK_MAX:
        Kp = _round_up(K, 512)
    Np = _round_up(N, 128)
    wp = jnp.pad(w2, ((0, Kp - K), (0, Np - N))).astype(jnp.bfloat16)
    bp = jnp.pad(b2, (0, Np - N)).reshape(1, Np).astype(jnp.float32)
    return dict(w=wp, b=bp)


def fold_conv(w, b, scale=None, shift=None):
    """PyTorch Conv2d weight (Cout,Cin,KH,KW) -> (KH*KW*Cin, Cout) matmul weight."""
    Cout, Cin, KH, KW = w.shape
    if scale is not None:
        w = w * scale[:, None, None, None]
        b = b * scale + shift
    w2 = jnp.transpose(w, (2, 3, 1, 0)).reshape(KH * KW * Cin, Cout)
    return _pad_matmul_operands(w2, b)


def fold_convT(w_t, b, scale, shift):
    """PyTorch ConvTranspose2d weight (Cin,Cout,3,3) -> (4*Cin, 4*Cout) sub-kernel weight.

    Output parity classes (a,b): out[2q+a, 2r+b] uses input taps (q+dh, r+dw),
    dh,dw in {0,1}, with kernel taps (a=0,dh=0)->1, (a=1,dh=0)->2, (a=1,dh=1)->0.
    """
    Cin, Cout, KH, KW = w_t.shape
    assert (KH, KW) == (3, 3), "sub-kernel decomposition assumes 3x3, stride 2"
    wf = w_t * scale[None, :, None, None]
    bf = b * scale + shift
    tap = {(0, 0): 1, (0, 1): None, (1, 0): 2, (1, 1): 0}
    wc = jnp.zeros((2, 2, Cin, 2, 2, Cout), jnp.float32)
    for a in (0, 1):
        for bb in (0, 1):
            for dh in (0, 1):
                for dw in (0, 1):
                    kr, kc = tap[(a, dh)], tap[(bb, dw)]
                    if kr is None or kc is None:
                        continue
                    wc = wc.at[dh, dw, :, a, bb, :].set(wf[:, :, kr, kc])
    w2 = wc.reshape(4 * Cin, 4 * Cout)
    b2 = jnp.tile(bf, 4)                        # same bias for all 4 classes
    return _pad_matmul_operands(w2, b2)


def fold_latent_head(fc_mu, fc_var, dec_input, latent_dim, feat_chw):
    """Concatenate fc_mu | fc_var, row-permuted to consume the NHWC flatten
    directly, plus decoder_input folded into the same kernel."""
    C, Hf, Wf = feat_chw
    mid_dim = fc_mu["w"].shape[1]
    assert mid_dim == C * Hf * Wf
    j = jnp.arange(mid_dim)
    c = j % C
    wcol = (j // C) % Wf
    h = j // (C * Wf)
    chw = c * (Hf * Wf) + h * Wf + wcol        # CHW index read by NHWC row j
    Dp = _round_up(latent_dim, 128)
    Kp = _round_up(mid_dim, 128)
    w = jnp.zeros((Kp, 2 * Dp), jnp.float32)
    w = w.at[:mid_dim, :latent_dim].set(fc_mu["w"][:, chw].T)
    w = w.at[:mid_dim, Dp:Dp + latent_dim].set(fc_var["w"][:, chw].T)
    b = jnp.zeros((1, 2 * Dp), jnp.float32)
    b = b.at[0, :latent_dim].set(fc_mu["b"])
    b = b.at[0, Dp:Dp + latent_dim].set(fc_var["b"])
    Npd = _round_up(mid_dim, 128)
    wd = jnp.zeros((Dp, Npd), jnp.float32)
    wd = wd.at[:latent_dim, :mid_dim].set(dec_input["w"].T)
    bd = jnp.zeros((1, Npd), jnp.float32)
    bd = bd.at[0, :mid_dim].set(dec_input["b"])
    return dict(w=w.astype(jnp.bfloat16), b=b,
                wd=wd.astype(jnp.bfloat16), bd=bd)


def fold_params(params, latent_dim, feat_hw, hidden_dims):
    fp = {}
    enc = []
    for p in params["encoder"]:
        s, t = _bn_scale_shift(p)
        enc.append(fold_conv(p["w"], p["b"], s, t))
    fp["encoder"] = enc
    fp["latent_head"] = fold_latent_head(
        params["fc_mu"], params["fc_var"], params["dec_input"], latent_dim,
        (hidden_dims[-1],) + tuple(feat_hw))
    dec = []
    for p in params["decoder"]:
        s, t = _bn_scale_shift(p)
        dec.append(fold_convT(p["w"], p["b"], s, t))
    fp["decoder"] = dec
    p = params["final_convT"]
    s, t = _bn_scale_shift(p)
    fp["final_convT"] = fold_convT(p["w"], p["b"], s, t)
    p = params["final_conv"]
    fp["final_conv"] = fold_conv(p["w"], p["b"])
    return fp


# -----------------------------------------------------------------------------
# Deterministic parameter construction (shapes follow the nn.Module __init__)
# -----------------------------------------------------------------------------
def init_params(key, in_channels, hidden_dims, latent_dim, mid_dim):
    keys = list(jax.random.split(key, 128))
    it = iter(keys)

    def nrm(shape, scale=0.1):
        return jax.random.normal(next(it), shape, jnp.float32) * scale

    def bn(c):
        return dict(gamma=1.0 + nrm((c,), 0.05), beta=nrm((c,), 0.05),
                    mean=nrm((c,), 0.05), var=1.0 + jnp.abs(nrm((c,), 0.05)))

    params = {}
    enc, c = [], in_channels
    for h in hidden_dims:                      # Conv2d(c, h, 3, 2, 1)+BN+LeakyReLU
        enc.append(dict(w=nrm((h, c, 3, 3)), b=nrm((h,)), **bn(h)))
        c = h
    params["encoder"] = enc
    params["fc_mu"] = dict(w=nrm((latent_dim, mid_dim)), b=nrm((latent_dim,)))
    params["fc_var"] = dict(w=nrm((latent_dim, mid_dim)), b=nrm((latent_dim,)))
    params["dec_input"] = dict(w=nrm((mid_dim, latent_dim)), b=nrm((mid_dim,)))
    rev = hidden_dims[::-1]
    dec = []
    for i in range(len(rev) - 1):              # ConvT(rev[i],rev[i+1],3,2,1,1)+BN+LReLU
        dec.append(dict(w=nrm((rev[i], rev[i + 1], 3, 3)), b=nrm((rev[i + 1],)),
                        **bn(rev[i + 1])))
    params["decoder"] = dec
    params["final_convT"] = dict(w=nrm((rev[-1], rev[-1], 3, 3)),
                                 b=nrm((rev[-1],)), **bn(rev[-1]))
    params["final_conv"] = dict(w=nrm((3, rev[-1], 3, 3)), b=nrm((3,)))
    return params


# -----------------------------------------------------------------------------
# Full forward pass (mirrors VanillaVAE.forward); activations NHWC bf16 internally
# -----------------------------------------------------------------------------
def vanilla_vae_forward(x_nchw, fparams, eps, *, hidden_dims, mid_inflate, latent_dim):
    B = x_nchw.shape[0]
    h = jnp.transpose(x_nchw, (0, 2, 3, 1))                 # NCHW -> NHWC once
    for lyr, cout in zip(fparams["encoder"], hidden_dims):
        h = conv2d_fused(h, lyr, cout, 3, 3, 2, 1, "leaky_relu")
    # returned pre_latents keeps the PyTorch Rearrange('B C H W -> B (C H W)') order
    pre_latents = jnp.transpose(h, (0, 3, 1, 2)).reshape(B, -1).astype(jnp.float32)
    rev = list(hidden_dims[::-1])
    mid_dim = rev[0] * mid_inflate * mid_inflate
    # head weights are row-permuted -> consume the NHWC flatten directly
    mu, log_var, z, d = latent_head(h.reshape(B, -1), fparams["latent_head"],
                                    eps, latent_dim, mid_dim)
    d = d.reshape(B, rev[0], mid_inflate, mid_inflate).transpose(0, 2, 3, 1)  # NHWC
    for lyr, cout in zip(fparams["decoder"], rev[1:]):
        d = conv_transpose2d_fused(d, lyr, cout, "leaky_relu")
    d = conv_transpose2d_fused(d, fparams["final_convT"], rev[-1], "leaky_relu")
    out = conv2d_fused(d, fparams["final_conv"], 3, 3, 3, 1, 1, "tanh",
                       out_dtype=jnp.float32)
    out = jnp.transpose(out, (0, 3, 1, 2))                  # back to NCHW once
    return {"output": out, "input": x_nchw,
            "encoded": {"mu": mu, "log_var": log_var, "pre_latents": pre_latents},
            "latents": z}


# -----------------------------------------------------------------------------
if __name__ == "__main__":
    # small, self-consistent config: 16x16 input -> encoder halves spatial 3x
    in_channels = 3
    hidden_dims = [8, 16, 32]
    latent_dim = 16
    mid_inflate = 2
    B, H, W = 2, 16, 16
    mid_dim = hidden_dims[-1] * mid_inflate * mid_inflate    # 32*2*2 = 128
    feat_hw = (H // 2 ** len(hidden_dims), W // 2 ** len(hidden_dims))  # (2, 2)

    key = jax.random.PRNGKey(0)
    kx, keps, kp = jax.random.split(key, 3)
    x = jax.random.normal(kx, (B, in_channels, H, W), jnp.float32)
    # TODO(synk): torch.randn_like is replaced by a host-side fixed-key gaussian.
    eps = jax.random.normal(keps, (B, latent_dim), jnp.float32)
    params = init_params(kp, in_channels, hidden_dims, latent_dim, mid_dim)
    fparams = fold_params(params, latent_dim, feat_hw, hidden_dims)

    fwd = jax.jit(functools.partial(
        vanilla_vae_forward, hidden_dims=tuple(hidden_dims),
        mid_inflate=mid_inflate, latent_dim=latent_dim))
    result = jax.block_until_ready(fwd(x, fparams, eps))

    assert result["output"].shape == (B, 3, H, W)
    assert result["encoded"]["mu"].shape == (B, latent_dim)
    assert result["encoded"]["log_var"].shape == (B, latent_dim)
    assert result["encoded"]["pre_latents"].shape == (B, mid_dim)
    assert result["latents"].shape == (B, latent_dim)
    assert bool(jnp.all(jnp.isfinite(result["output"])))
    assert bool(jnp.all(jnp.isfinite(result["latents"])))
    # TODO(synk): loss()/sample()/generate() helpers not implemented (forward only).
    print("KERNEL_OK")
</pallas_src>

<mosaic_0001>
module attributes {stable_mosaic.version = 11 : i64} {
  func.func @_matmul_act_kernel(%arg0: i32, %arg1: memref<64x128xbf16, #tpu.memory_space<vmem>>, %arg2: memref<128x128xbf16, #tpu.memory_space<vmem>>, %arg3: memref<1x128xf32, #tpu.memory_space<vmem>>, %arg4: memref<64x128xbf16, #tpu.memory_space<vmem>>) attributes {dimension_semantics = [#tpu.dimension_semantics<parallel>], iteration_bounds = array<i64: 2>, scalar_prefetch = 0 : i64, scratch_operands = 0 : i64, tpu.core_type = #tpu.core_type<tc>, window_params = [{transform_indices = @transform_0, window_bounds = array<i64: 64, 128>}, {pipeline_mode = #tpu.pipeline_mode<synchronous>, transform_indices = @transform_1, window_bounds = array<i64: 128, 128>}, {pipeline_mode = #tpu.pipeline_mode<synchronous>, transform_indices = @transform_2, window_bounds = array<i64: 1, 128>}, {transform_indices = @transform_3, window_bounds = array<i64: 64, 128>}]} {
    %c0 = arith.constant 0 : index
    %c0_0 = arith.constant 0 : index
    %0 = vector.load %arg1[%c0, %c0_0] : memref<64x128xbf16, #tpu.memory_space<vmem>>, vector<64x128xbf16>
    %c0_1 = arith.constant 0 : index
    %c0_2 = arith.constant 0 : index
    %1 = vector.load %arg2[%c0_1, %c0_2] : memref<128x128xbf16, #tpu.memory_space<vmem>>, vector<128x128xbf16>
    %cst = arith.constant dense<0.000000e+00> : vector<64x128xf32>
    %2 = tpu.matmul %0, %1, %cst {dimension_numbers = #tpu.dot_dimension_numbers<[1], [0], [0], [1], [0, 0, 1, 1], [], []>} : vector<64x128xbf16>, vector<128x128xbf16>, vector<64x128xf32> -> vector<64x128xf32>
    %c0_3 = arith.constant 0 : index
    %c0_4 = arith.constant 0 : index
    %3 = vector.load %arg3[%c0_3, %c0_4] : memref<1x128xf32, #tpu.memory_space<vmem>>, vector<1x128xf32>
    %4 = vector.broadcast %3 : vector<1x128xf32> to vector<64x128xf32>
    %5 = arith.addf %2, %4 : vector<64x128xf32>
    %cst_5 = arith.constant 0.000000e+00 : f32
    %6 = vector.broadcast %cst_5 : f32 to vector<64x128xf32>
    %7 = arith.cmpf oge, %5, %6 : vector<64x128xf32>
    %cst_6 = arith.constant 0.00999999977 : f32
    %8 = vector.broadcast %cst_6 : f32 to vector<64x128xf32>
    %9 = arith.mulf %8, %5 : vector<64x128xf32>
    %10 = arith.select %7, %5, %9 : vector<64x128xi1>, vector<64x128xf32>
    %11 = arith.truncf %10 : vector<64x128xf32> to vector<64x128xbf16>
    %c0_7 = arith.constant 0 : index
    %c0_8 = arith.constant 0 : index
    %12 = vector.load %arg4[%c0_7, %c0_8] : memref<64x128xbf16, #tpu.memory_space<vmem>>, vector<64x128xbf16>
    tpu.vector_store %arg4[%c0_7, %c0_8], %11 {strides = array<i32>} : memref<64x128xbf16, #tpu.memory_space<vmem>>, vector<64x128xbf16>,
    return
  }
  func.func @transform_0(%arg0: i32) -> (i32, i32) {
    %c0_i32 = arith.constant 0 : i32
    %c0_i32_0 = arith.constant 0 : i32
    return %arg0, %c0_i32 : i32, i32
  }
  func.func @transform_1(%arg0: i32) -> (i32, i32) {
    %c0_i32 = arith.constant 0 : i32
    %c0_i32_0 = arith.constant 0 : i32
    %c0_i32_1 = arith.constant 0 : i32
    return %c0_i32, %c0_i32_0 : i32, i32
  }
  func.func @transform_2(%arg0: i32) -> (i32, i32) {
    %c0_i32 = arith.constant 0 : i32
    %c0_i32_0 = arith.constant 0 : i32
    %c0_i32_1 = arith.constant 0 : i32
    return %c0_i32, %c0_i32_0 : i32, i32
  }
  func.func @transform_3(%arg0: i32) -> (i32, i32) {
    %c0_i32 = arith.constant 0 : i32
    %c0_i32_0 = arith.constant 0 : i32
    return %arg0, %c0_i32 : i32, i32
  }
}

module attributes {stable_mosaic.version = 11 : i64} {
  func.func @_matmul_act_kernel(%arg0: i32, %arg1: memref<16x128xbf16, #tpu.memory_space<vmem>>, %arg2: memref<128x128xbf16, #tpu.memory_space<vmem>>, %arg3: memref<1x128xf32, #tpu.memory_space<vmem>>, %arg4: memref<16x128xbf16, #tpu.memory_space<vmem>>) attributes {dimension_semantics = [#tpu.dimension_semantics<parallel>], iteration_bounds = array<i64: 2>, scalar_prefetch = 0 : i64, scratch_operands = 0 : i64, tpu.core_type = #tpu.core_type<tc>, window_params = [{transform_indices = @transform_0, window_bounds = array<i64: 16, 128>}, {pipeline_mode = #tpu.pipeline_mode<synchronous>, transform_indices = @transform_1, window_bounds = array<i64: 128, 128>}, {pipeline_mode = #tpu.pipeline_mode<synchronous>, transform_indices = @transform_2, window_bounds = array<i64: 1, 128>}, {transform_indices = @transform_3, window_bounds = array<i64: 16, 128>}]} {
    %c0 = arith.constant 0 : index
    %c0_0 = arith.constant 0 : index
    %0 = vector.load %arg1[%c0, %c0_0] : memref<16x128xbf16, #tpu.memory_space<vmem>>, vector<16x128xbf16>
    %c0_1 = arith.constant 0 : index
    %c0_2 = arith.constant 0 : index
    %1 = vector.load %arg2[%c0_1, %c0_2] : memref<128x128xbf16, #tpu.memory_space<vmem>>, vector<128x128xbf16>
    %cst = arith.constant dense<0.000000e+00> : vector<16x128xf32>
    %2 = tpu.matmul %0, %1, %cst {dimension_numbers = #tpu.dot_dimension_numbers<[1], [0], [0], [1], [0, 0, 1, 1], [], []>} : vector<16x128xbf16>, vector<128x128xbf16>, vector<16x128xf32> -> vector<16x128xf32>
    %c0_3 = arith.constant 0 : index
    %c0_4 = arith.constant 0 : index
    %3 = vector.load %arg3[%c0_3, %c0_4] : memref<1x128xf32, #tpu.memory_space<vmem>>, vector<1x128xf32>
    %4 = vector.broadcast %3 : vector<1x128xf32> to vector<16x128xf32>
    %5 = arith.addf %2, %4 : vector<16x128xf32>
    %cst_5 = arith.constant 0.000000e+00 : f32
    %6 = vector.broadcast %cst_5 : f32 to vector<16x128xf32>
    %7 = arith.cmpf oge, %5, %6 : vector<16x128xf32>
    %cst_6 = arith.constant 0.00999999977 : f32
    %8 = vector.broadcast %cst_6 : f32 to vector<16x128xf32>
    %9 = arith.mulf %8, %5 : vector<16x128xf32>
    %10 = arith.select %7, %5, %9 : vector<16x128xi1>, vector<16x128xf32>
    %11 = arith.truncf %10 : vector<16x128xf32> to vector<16x128xbf16>
    %c0_7 = arith.constant 0 : index
    %c0_8 = arith.constant 0 : index
    %12 = vector.load %arg4[%c0_7, %c0_8] : memref<16x128xbf16, #tpu.memory_space<vmem>>, vector<16x128xbf16>
    tpu.vector_store %arg4[%c0_7, %c0_8], %11 {strides = array<i32>} : memref<16x128xbf16, #tpu.memory_space<vmem>>, vector<16x128xbf16>,
    return
  }
  func.func @transform_0(%arg0: i32) -> (i32, i32) {
    %c0_i32 = arith.constant 0 : i32
    %c0_i32_0 = arith.constant 0 : i32
    return %arg0, %c0_i32 : i32, i32
  }
  func.func @transform_1(%arg0: i32) -> (i32, i32) {
    %c0_i32 = arith.constant 0 : i32
    %c0_i32_0 = arith.constant 0 : i32
    %c0_i32_1 = arith.constant 0 : i32
    return %c0_i32, %c0_i32_0 : i32, i32
  }
  func.func @transform_2(%arg0: i32) -> (i32, i32) {
    %c0_i32 = arith.constant 0 : i32
    %c0_i32_0 = arith.constant 0 : i32
    %c0_i32_1 = arith.constant 0 : i32
    return %c0_i32, %c0_i32_0 : i32, i32
  }
  func.func @transform_3(%arg0: i32) -> (i32, i32) {
    %c0_i32 = arith.constant 0 : i32
    %c0_i32_0 = arith.constant 0 : i32
    return %arg0, %c0_i32 : i32, i32
  }
}

module attributes {stable_mosaic.version = 11 : i64} {
  func.func @_matmul_act_kernel(%arg0: i32, %arg1: memref<16x256xbf16, #tpu.memory_space<vmem>>, %arg2: memref<256x128xbf16, #tpu.memory_space<vmem>>, %arg3: memref<1x128xf32, #tpu.memory_space<vmem>>, %arg4: memref<16x128xbf16, #tpu.memory_space<vmem>>) attributes {dimension_semantics = [#tpu.dimension_semantics<parallel>], iteration_bounds = array<i64: 1>, scalar_prefetch = 0 : i64, scratch_operands = 0 : i64, tpu.core_type = #tpu.core_type<tc>, window_params = [{transform_indices = @transform_0, window_bounds = array<i64: 16, 256>}, {pipeline_mode = #tpu.pipeline_mode<synchronous>, transform_indices = @transform_1, window_bounds = array<i64: 256, 128>}, {pipeline_mode = #tpu.pipeline_mode<synchronous>, transform_indices = @transform_2, window_bounds = array<i64: 1, 128>}, {transform_indices = @transform_3, window_bounds = array<i64: 16, 128>}]} {
    %c0 = arith.constant 0 : index
    %c0_0 = arith.constant 0 : index
    %0 = vector.load %arg1[%c0, %c0_0] : memref<16x256xbf16, #tpu.memory_space<vmem>>, vector<16x256xbf16>
    %c0_1 = arith.constant 0 : index
    %c0_2 = arith.constant 0 : index
    %1 = vector.load %arg2[%c0_1, %c0_2] : memref<256x128xbf16, #tpu.memory_space<vmem>>, vector<256x128xbf16>
    %cst = arith.constant dense<0.000000e+00> : vector<16x128xf32>
    %2 = tpu.matmul %0, %1, %cst {dimension_numbers = #tpu.dot_dimension_numbers<[1], [0], [0], [1], [0, 0, 1, 1], [], []>} : vector<16x256xbf16>, vector<256x128xbf16>, vector<16x128xf32> -> vector<16x128xf32>
    %c0_3 = arith.constant 0 : index
    %c0_4 = arith.constant 0 : index
    %3 = vector.load %arg3[%c0_3, %c0_4] : memref<1x128xf32, #tpu.memory_space<vmem>>, vector<1x128xf32>
    %4 = vector.broadcast %3 : vector<1x128xf32> to vector<16x128xf32>
    %5 = arith.addf %2, %4 : vector<16x128xf32>
    %cst_5 = arith.constant 0.000000e+00 : f32
    %6 = vector.broadcast %cst_5 : f32 to vector<16x128xf32>
    %7 = arith.cmpf oge, %5, %6 : vector<16x128xf32>
    %cst_6 = arith.constant 0.00999999977 : f32
    %8 = vector.broadcast %cst_6 : f32 to vector<16x128xf32>
    %9 = arith.mulf %8, %5 : vector<16x128xf32>
    %10 = arith.select %7, %5, %9 : vector<16x128xi1>, vector<16x128xf32>
    %11 = arith.truncf %10 : vector<16x128xf32> to vector<16x128xbf16>
    %c0_7 = arith.constant 0 : index
    %c0_8 = arith.constant 0 : index
    %12 = vector.load %arg4[%c0_7, %c0_8] : memref<16x128xbf16, #tpu.memory_space<vmem>>, vector<16x128xbf16>
    tpu.vector_store %arg4[%c0_7, %c0_8], %11 {strides = array<i32>} : memref<16x128xbf16, #tpu.memory_space<vmem>>, vector<16x128xbf16>,
    return
  }
  func.func @transform_0(%arg0: i32) -> (i32, i32) {
    %c0_i32 = arith.constant 0 : i32
    %c0_i32_0 = arith.constant 0 : i32
    return %arg0, %c0_i32 : i32, i32
  }
  func.func @transform_1(%arg0: i32) -> (i32, i32) {
    %c0_i32 = arith.constant 0 : i32
    %c0_i32_0 = arith.constant 0 : i32
    %c0_i32_1 = arith.constant 0 : i32
    return %c0_i32, %c0_i32_0 : i32, i32
  }
  func.func @transform_2(%arg0: i32) -> (i32, i32) {
    %c0_i32 = arith.constant 0 : i32
    %c0_i32_0 = arith.constant 0 : i32
    %c0_i32_1 = arith.constant 0 : i32
    return %c0_i32, %c0_i32_0 : i32, i32
  }
  func.func @transform_3(%arg0: i32) -> (i32, i32) {
    %c0_i32 = arith.constant 0 : i32
    %c0_i32_0 = arith.constant 0 : i32
    return %arg0, %c0_i32 : i32, i32
  }
}

module attributes {stable_mosaic.version = 11 : i64} {
  func.func @_latent_head_kernel(%arg0: i32, %arg1: memref<16x128xbf16, #tpu.memory_space<vmem>>, %arg2: memref<128x256xbf16, #tpu.memory_space<vmem>>, %arg3: memref<1x256xf32, #tpu.memory_space<vmem>>, %arg4: memref<16x128xf32, #tpu.memory_space<vmem>>, %arg5: memref<128x128xbf16, #tpu.memory_space<vmem>>, %arg6: memref<1x128xf32, #tpu.memory_space<vmem>>, %arg7: memref<16x128xf32, #tpu.memory_space<vmem>>, %arg8: memref<16x128xf32, #tpu.memory_space<vmem>>, %arg9: memref<16x128xf32, #tpu.memory_space<vmem>>, %arg10: memref<16x128xbf16, #tpu.memory_space<vmem>>) attributes {dimension_semantics = [#tpu.dimension_semantics<arbitrary>], iteration_bounds = array<i64: 1>, scalar_prefetch = 0 : i64, scratch_operands = 0 : i64, tpu.core_type = #tpu.core_type<tc>, window_params = [{pipeline_mode = #tpu.pipeline_mode<synchronous>, transform_indices = @transform_0, window_bounds = array<i64: 16, 128>}, {pipeline_mode = #tpu.pipeline_mode<synchronous>, transform_indices = @transform_1, window_bounds = array<i64: 128, 256>}, {pipeline_mode = #tpu.pipeline_mode<synchronous>, transform_indices = @transform_2, window_bounds = array<i64: 1, 256>}, {pipeline_mode = #tpu.pipeline_mode<synchronous>, transform_indices = @transform_3, window_bounds = array<i64: 16, 128>}, {pipeline_mode = #tpu.pipeline_mode<synchronous>, transform_indices = @transform_4, window_bounds = array<i64: 128, 128>}, {pipeline_mode = #tpu.pipeline_mode<synchronous>, transform_indices = @transform_5, window_bounds = array<i64: 1, 128>}, {pipeline_mode = #tpu.pipeline_mode<synchronous>, transform_indices = @transform_6, window_bounds = array<i64: 16, 128>}, {pipeline_mode = #tpu.pipeline_mode<synchronous>, transform_indices = @transform_7, window_bounds = array<i64: 16, 128>}, {pipeline_mode = #tpu.pipeline_mode<synchronous>, transform_indices = @transform_8, window_bounds = array<i64: 16, 128>}, {pipeline_mode = #tpu.pipeline_mode<synchronous>, transform_indices = @transform_9, window_bounds = array<i64: 16, 128>}]} {
    %c0 = arith.constant 0 : index
    %c0_0 = arith.constant 0 : index
    %0 = vector.load %arg1[%c0, %c0_0] : memref<16x128xbf16, #tpu.memory_space<vmem>>, vector<16x128xbf16>
    %c0_1 = arith.constant 0 : index
    %c0_2 = arith.constant 0 : index
    %1 = vector.load %arg2[%c0_1, %c0_2] : memref<128x256xbf16, #tpu.memory_space<vmem>>, vector<128x256xbf16>
    %cst = arith.constant dense<0.000000e+00> : vector<16x256xf32>
    %2 = tpu.matmul %0, %1, %cst {dimension_numbers = #tpu.dot_dimension_numbers<[1], [0], [0], [1], [0, 0, 1, 1], [], []>} : vector<16x128xbf16>, vector<128x256xbf16>, vector<16x256xf32> -> vector<16x256xf32>
    %c0_3 = arith.constant 0 : index
    %c0_4 = arith.constant 0 : index
    %3 = vector.load %arg3[%c0_3, %c0_4] : memref<1x256xf32, #tpu.memory_space<vmem>>, vector<1x256xf32>
    %4 = vector.broadcast %3 : vector<1x256xf32> to vector<16x256xf32>
    %5 = arith.addf %2, %4 : vector<16x256xf32>
    %6 = vector.extract_strided_slice %5 {offsets = [0, 0], sizes = [16, 128], strides = [1, 1]} : vector<16x256xf32> to vector<16x128xf32>
    %7 = vector.extract_strided_slice %5 {offsets = [0, 128], sizes = [16, 128], strides = [1, 1]} : vector<16x256xf32> to vector<16x128xf32>
    %c0_5 = arith.constant 0 : index
    %c0_6 = arith.constant 0 : index
    %8 = vector.load %arg4[%c0_5, %c0_6] : memref<16x128xf32, #tpu.memory_space<vmem>>, vector<16x128xf32>
    %cst_7 = arith.constant 5.000000e-01 : f32
    %9 = vector.broadcast %cst_7 : f32 to vector<16x128xf32>
    %10 = arith.mulf %9, %7 : vector<16x128xf32>
    %11 = math.exp %10 : vector<16x128xf32>
    %12 = arith.mulf %8, %11 : vector<16x128xf32>
    %13 = arith.addf %12, %6 : vector<16x128xf32>
    %c0_8 = arith.constant 0 : index
    %c0_9 = arith.constant 0 : index
    %14 = vector.load %arg7[%c0_8, %c0_9] : memref<16x128xf32, #tpu.memory_space<vmem>>, vector<16x128xf32>
    tpu.vector_store %arg7[%c0_8, %c0_9], %6 {strides = array<i32>} : memref<16x128xf32, #tpu.memory_space<vmem>>, vector<16x128xf32>,
    %c0_10 = arith.constant 0 : index
    %c0_11 = arith.constant 0 : index
    %15 = vector.load %arg8[%c0_10, %c0_11] : memref<16x128xf32, #tpu.memory_space<vmem>>, vector<16x128xf32>
    tpu.vector_store %arg8[%c0_10, %c0_11], %7 {strides = array<i32>} : memref<16x128xf32, #tpu.memory_space<vmem>>, vector<16x128xf32>,
    %c0_12 = arith.constant 0 : index
    %c0_13 = arith.constant 0 : index
    %16 = vector.load %arg9[%c0_12, %c0_13] : memref<16x128xf32, #tpu.memory_space<vmem>>, vector<16x128xf32>
    tpu.vector_store %arg9[%c0_12, %c0_13], %13 {strides = array<i32>} : memref<16x128xf32, #tpu.memory_space<vmem>>, vector<16x128xf32>,
    %17 = arith.truncf %13 : vector<16x128xf32> to vector<16x128xbf16>
    %c0_14 = arith.constant 0 : index
    %c0_15 = arith.constant 0 : index
    %18 = vector.load %arg5[%c0_14, %c0_15] : memref<128x128xbf16, #tpu.memory_space<vmem>>, vector<128x128xbf16>
    %cst_16 = arith.constant dense<0.000000e+00> : vector<16x128xf32>
    %19 = tpu.matmul %17, %18, %cst_16 {dimension_numbers = #tpu.dot_dimension_numbers<[1], [0], [0], [1], [0, 0, 1, 1], [], []>} : vector<16x128xbf16>, vector<128x128xbf16>, vector<16x128xf32> -> vector<16x128xf32>
    %c0_17 = arith.constant 0 : index
    %c0_18 = arith.constant 0 : index
    %20 = vector.load %arg6[%c0_17, %c0_18] : memref<1x128xf32, #tpu.memory_space<vmem>>, vector<1x128xf32>
    %21 = vector.broadcast %20 : vector<1x128xf32> to vector<16x128xf32>
    %22 = arith.addf %19, %21 : vector<16x128xf32>
    %23 = arith.truncf %22 : vector<16x128xf32> to vector<16x128xbf16>
    %c0_19 = arith.constant 0 : index
    %c0_20 = arith.constant 0 : index
    %24 = vector.load %arg10[%c0_19, %c0_20] : memref<16x128xbf16, #tpu.memory_space<vmem>>, vector<16x128xbf16>
    tpu.vector_store %arg10[%c0_19, %c0_20], %23 {strides = array<i32>} : memref<16x128xbf16, #tpu.memory_space<vmem>>, vector<16x128xbf16>,
    return
  }
  func.func @transform_0(%arg0: i32) -> (i32, i32) {
    %c0_i32 = arith.constant 0 : i32
    %c0_i32_0 = arith.constant 0 : i32
    %c0_i32_1 = arith.constant 0 : i32
    return %c0_i32, %c0_i32_0 : i32, i32
  }
  func.func @transform_1(%arg0: i32) -> (i32, i32) {
    %c0_i32 = arith.constant 0 : i32
    %c0_i32_0 = arith.constant 0 : i32
    %c0_i32_1 = arith.constant 0 : i32
    return %c0_i32, %c0_i32_0 : i32, i32
  }
  func.func @transform_2(%arg0: i32) -> (i32, i32) {
    %c0_i32 = arith.constant 0 : i32
    %c0_i32_0 = arith.constant 0 : i32
    %c0_i32_1 = arith.constant 0 : i32
    return %c0_i32, %c0_i32_0 : i32, i32
  }
  func.func @transform_3(%arg0: i32) -> (i32, i32) {
    %c0_i32 = arith.constant 0 : i32
    %c0_i32_0 = arith.constant 0 : i32
    %c0_i32_1 = arith.constant 0 : i32
    return %c0_i32, %c0_i32_0 : i32, i32
  }
  func.func @transform_4(%arg0: i32) -> (i32, i32) {
    %c0_i32 = arith.constant 0 : i32
    %c0_i32_0 = arith.constant 0 : i32
    %c0_i32_1 = arith.constant 0 : i32
    return %c0_i32, %c0_i32_0 : i32, i32
  }
  func.func @transform_5(%arg0: i32) -> (i32, i32) {
    %c0_i32 = arith.constant 0 : i32
    %c0_i32_0 = arith.constant 0 : i32
    %c0_i32_1 = arith.constant 0 : i32
    return %c0_i32, %c0_i32_0 : i32, i32
  }
  func.func @transform_6(%arg0: i32) -> (i32, i32) {
    %c0_i32 = arith.constant 0 : i32
    %c0_i32_0 = arith.constant 0 : i32
    %c0_i32_1 = arith.constant 0 : i32
    return %c0_i32, %c0_i32_0 : i32, i32
  }
  func.func @transform_7(%arg0: i32) -> (i32, i32) {
    %c0_i32 = arith.constant 0 : i32
    %c0_i32_0 = arith.constant 0 : i32
    %c0_i32_1 = arith.constant 0 : i32
    return %c0_i32, %c0_i32_0 : i32, i32
  }
  func.func @transform_8(%arg0: i32) -> (i32, i32) {
    %c0_i32 = arith.constant 0 : i32
    %c0_i32_0 = arith.constant 0 : i32
    %c0_i32_1 = arith.constant 0 : i32
    return %c0_i32, %c0_i32_0 : i32, i32
  }
  func.func @transform_9(%arg0: i32) -> (i32, i32) {
    %c0_i32 = arith.constant 0 : i32
    %c0_i32_0 = arith.constant 0 : i32
    %c0_i32_1 = arith.constant 0 : i32
    return %c0_i32, %c0_i32_0 : i32, i32
  }
}

module attributes {stable_mosaic.version = 11 : i64} {
  func.func @_matmul_act_kernel(%arg0: i32, %arg1: memref<16x128xbf16, #tpu.memory_space<vmem>>, %arg2: memref<128x128xbf16, #tpu.memory_space<vmem>>, %arg3: memref<1x128xf32, #tpu.memory_space<vmem>>, %arg4: memref<16x128xbf16, #tpu.memory_space<vmem>>) attributes {dimension_semantics = [#tpu.dimension_semantics<parallel>], iteration_bounds = array<i64: 1>, scalar_prefetch = 0 : i64, scratch_operands = 0 : i64, tpu.core_type = #tpu.core_type<tc>, window_params = [{transform_indices = @transform_0, window_bounds = array<i64: 16, 128>}, {pipeline_mode = #tpu.pipeline_mode<synchronous>, transform_indices = @transform_1, window_bounds = array<i64: 128, 128>}, {pipeline_mode = #tpu.pipeline_mode<synchronous>, transform_indices = @transform_2, window_bounds = array<i64: 1, 128>}, {transform_indices = @transform_3, window_bounds = array<i64: 16, 128>}]} {
    %c0 = arith.constant 0 : index
    %c0_0 = arith.constant 0 : index
    %0 = vector.load %arg1[%c0, %c0_0] : memref<16x128xbf16, #tpu.memory_space<vmem>>, vector<16x128xbf16>
    %c0_1 = arith.constant 0 : index
    %c0_2 = arith.constant 0 : index
    %1 = vector.load %arg2[%c0_1, %c0_2] : memref<128x128xbf16, #tpu.memory_space<vmem>>, vector<128x128xbf16>
    %cst = arith.constant dense<0.000000e+00> : vector<16x128xf32>
    %2 = tpu.matmul %0, %1, %cst {dimension_numbers = #tpu.dot_dimension_numbers<[1], [0], [0], [1], [0, 0, 1, 1], [], []>} : vector<16x128xbf16>, vector<128x128xbf16>, vector<16x128xf32> -> vector<16x128xf32>
    %c0_3 = arith.constant 0 : index
    %c0_4 = arith.constant 0 : index
    %3 = vector.load %arg3[%c0_3, %c0_4] : memref<1x128xf32, #tpu.memory_space<vmem>>, vector<1x128xf32>
    %4 = vector.broadcast %3 : vector<1x128xf32> to vector<16x128xf32>
    %5 = arith.addf %2, %4 : vector<16x128xf32>
    %cst_5 = arith.constant 0.000000e+00 : f32
    %6 = vector.broadcast %cst_5 : f32 to vector<16x128xf32>
    %7 = arith.cmpf oge, %5, %6 : vector<16x128xf32>
    %cst_6 = arith.constant 0.00999999977 : f32
    %8 = vector.broadcast %cst_6 : f32 to vector<16x128xf32>
    %9 = arith.mulf %8, %5 : vector<16x128xf32>
    %10 = arith.select %7, %5, %9 : vector<16x128xi1>, vector<16x128xf32>
    %11 = arith.truncf %10 : vector<16x128xf32> to vector<16x128xbf16>
    %c0_7 = arith.constant 0 : index
    %c0_8 = arith.constant 0 : index
    %12 = vector.load %arg4[%c0_7, %c0_8] : memref<16x128xbf16, #tpu.memory_space<vmem>>, vector<16x128xbf16>
    tpu.vector_store %arg4[%c0_7, %c0_8], %11 {strides = array<i32>} : memref<16x128xbf16, #tpu.memory_space<vmem>>, vector<16x128xbf16>,
    return
  }
  func.func @transform_0(%arg0: i32) -> (i32, i32) {
    %c0_i32 = arith.constant 0 : i32
    %c0_i32_0 = arith.constant 0 : i32
    return %arg0, %c0_i32 : i32, i32
  }
  func.func @transform_1(%arg0: i32) -> (i32, i32) {
    %c0_i32 = arith.constant 0 : i32
    %c0_i32_0 = arith.constant 0 : i32
    %c0_i32_1 = arith.constant 0 : i32
    return %c0_i32, %c0_i32_0 : i32, i32
  }
  func.func @transform_2(%arg0: i32) -> (i32, i32) {
    %c0_i32 = arith.constant 0 : i32
    %c0_i32_0 = arith.constant 0 : i32
    %c0_i32_1 = arith.constant 0 : i32
    return %c0_i32, %c0_i32_0 : i32, i32
  }
  func.func @transform_3(%arg0: i32) -> (i32, i32) {
    %c0_i32 = arith.constant 0 : i32
    %c0_i32_0 = arith.constant 0 : i32
    return %arg0, %c0_i32 : i32, i32
  }
}

module attributes {stable_mosaic.version = 11 : i64} {
  func.func @_matmul_act_kernel(%arg0: i32, %arg1: memref<256x128xbf16, #tpu.memory_space<vmem>>, %arg2: memref<128x128xbf16, #tpu.memory_space<vmem>>, %arg3: memref<1x128xf32, #tpu.memory_space<vmem>>, %arg4: memref<256x128xf32, #tpu.memory_space<vmem>>) attributes {dimension_semantics = [#tpu.dimension_semantics<parallel>], iteration_bounds = array<i64: 2>, scalar_prefetch = 0 : i64, scratch_operands = 0 : i64, tpu.core_type = #tpu.core_type<tc>, window_params = [{transform_indices = @transform_0, window_bounds = array<i64: 256, 128>}, {pipeline_mode = #tpu.pipeline_mode<synchronous>, transform_indices = @transform_1, window_bounds = array<i64: 128, 128>}, {pipeline_mode = #tpu.pipeline_mode<synchronous>, transform_indices = @transform_2, window_bounds = array<i64: 1, 128>}, {transform_indices = @transform_3, window_bounds = array<i64: 256, 128>}]} {
    %c0 = arith.constant 0 : index
    %c0_0 = arith.constant 0 : index
    %0 = vector.load %arg1[%c0, %c0_0] : memref<256x128xbf16, #tpu.memory_space<vmem>>, vector<256x128xbf16>
    %c0_1 = arith.constant 0 : index
    %c0_2 = arith.constant 0 : index
    %1 = vector.load %arg2[%c0_1, %c0_2] : memref<128x128xbf16, #tpu.memory_space<vmem>>, vector<128x128xbf16>
    %cst = arith.constant dense<0.000000e+00> : vector<256x128xf32>
    %2 = tpu.matmul %0, %1, %cst {dimension_numbers = #tpu.dot_dimension_numbers<[1], [0], [0], [1], [0, 0, 1, 1], [], []>} : vector<256x128xbf16>, vector<128x128xbf16>, vector<256x128xf32> -> vector<256x128xf32>
    %c0_3 = arith.constant 0 : index
    %c0_4 = arith.constant 0 : index
    %3 = vector.load %arg3[%c0_3, %c0_4] : memref<1x128xf32, #tpu.memory_space<vmem>>, vector<1x128xf32>
    %4 = vector.broadcast %3 : vector<1x128xf32> to vector<256x128xf32>
    %5 = arith.addf %2, %4 : vector<256x128xf32>
    %6 = math.tanh %5 : vector<256x128xf32>
    %c0_5 = arith.constant 0 : index
    %c0_6 = arith.constant 0 : index
    %7 = vector.load %arg4[%c0_5, %c0_6] : memref<256x128xf32, #tpu.memory_space<vmem>>, vector<256x128xf32>
    tpu.vector_store %arg4[%c0_5, %c0_6], %6 {strides = array<i32>} : memref<256x128xf32, #tpu.memory_space<vmem>>, vector<256x128xf32>,
    return
  }
  func.func @transform_0(%arg0: i32) -> (i32, i32) {
    %c0_i32 = arith.constant 0 : i32
    %c0_i32_0 = arith.constant 0 : i32
    return %arg0, %c0_i32 : i32, i32
  }
  func.func @transform_1(%arg0: i32) -> (i32, i32) {
    %c0_i32 = arith.constant 0 : i32
    %c0_i32_0 = arith.constant 0 : i32
    %c0_i32_1 = arith.constant 0 : i32
    return %c0_i32, %c0_i32_0 : i32, i32
  }
  func.func @transform_2(%arg0: i32) -> (i32, i32) {
    %c0_i32 = arith.constant 0 : i32
    %c0_i32_0 = arith.constant 0 : i32
    %c0_i32_1 = arith.constant 0 : i32
    return %c0_i32, %c0_i32_0 : i32, i32
  }
  func.func @transform_3(%arg0: i32) -> (i32, i32) {
    %c0_i32 = arith.constant 0 : i32
    %c0_i32_0 = arith.constant 0 : i32
    return %arg0, %c0_i32 : i32, i32
  }
}

</mosaic_0001>

<bundles_post_ra>
// kernel: vanilla_vae_forward.9
= control target key start
LH: loop header
LB: loop body
LE: loop exit
PB: predicated region body
PF: predicated region fallthrough
CT: control target
= control target key end

     0   :  { %s475_s12 = smov 0   ;;  %s526_s0 = inlined_call_operand.vmem [shape: bf16[32,128], index: 0, kind: input, shape index: {}]   ;;  %s527_s1 = inlined_call_operand.vmem [shape: bf16[128,128], index: 1, kind: input, shape index: {}]   ;;  %s528_s2 = inlined_call_operand.vmem [shape: f32[1,128], index: 2, kind: input, shape index: {}]   ;;  %s529_s3 = inlined_call_operand.vmem [shape: bf16[32,128], index: 3, kind: output, shape index: {}]  }
   0x1 LB: > { %s367_s13 = sadd.s32 4294967295, %s451_s12   ;;  %p371_p0 = scmp.ge.s32.totalorder %s451_s12, 1  ;;  %s451_s12 = sphi %s475_s12, %s13_s12  }
   0x2   : > { %p138_p1 = scmp.lt.s32.totalorder %s451_s12, 3 }
   0x4   : > { %p139_p2 = pnand %p371_p0, %p138_p1 }
   0x5   : > { %v436_v0 = vld [vmem:[%s527_s1] sm:$0xff] (!%p139_p2)   ;;  %v453_v1 = vmov (!%p139_p2), 0.0   ;;  %v437_v2 = vld [vmem:[%s527_s1 + $0x8] sm:$0xff] (!%p139_p2)   ;;  %vm454_vm0 = vmmov (!%p139_p2), 0   ;;  %s372_s18 = sshll.u32 (!%p139_p2), %s367_s13, 1  ;;  %v438_v3 = vld [vmem:[%s527_s1 + $0x10] sm:$0xff] (!%p139_p2)  }
   0x6   : > { %142 = sbr.rel (%p139_p2) target bundleno = 260 (0x104), region = 32  ;;  %406 = vmatprep.subr.bf16.mxu0 (!%p139_p2), %v453_v1  ;;  %422 = vmatprep.mubr.msk.bf16.mxu0 (!%p139_p2), %vm454_vm0, %v453_v1  ;;  %p163_p3 = scmp.lt.s32.totalorder (!%p139_p2), %s372_s18, 3  ;;  %v439_v4 = vld [vmem:[%s527_s1 + $0x18] sm:$0xff] (!%p139_p2)   ;;  %v440_v5 = vld [vmem:[%s527_s1 + $0x20] sm:$0xff] (!%p139_p2)   ;;  %v441_v6 = vld [vmem:[%s527_s1 + $0x28] sm:$0xff] (!%p139_p2)  }
   0x7   : > { %407 = vmatpush3.bf16.msra.mxu0 (!%p139_p2), %v436_v0  ;;  %v442_v7 = vld [vmem:[%s527_s1 + $0x30] sm:$0xff] (!%p139_p2)   ;;  %v443_v8 = vld [vmem:[%s527_s1 + $0x38] sm:$0xff] (!%p139_p2)   ;;  %v376_v10 = vld [vmem:[%s528_s2] ss:$0 sm:$0xff] (!%p139_p2) }
   0x8   : > { %408 = vmatprep.subr.bf16.mxu0 (!%p139_p2), %v453_v1 }
   0xb   : > { %409 = vmatpush3.bf16.msra.mxu0 (!%p139_p2), %v437_v2 }
   0xc   : > { %410 = vmatprep.subr.bf16.mxu0 (!%p139_p2), %v453_v1 }
   0xd   : > { %s531_s18 = smov (!%p163_p3, %s372_s18), 3 }
   0xe   : > { %s373_s21 = sshll.u32 %s531_s18, 2 }
   0xf   : > { %s166_s24 = scalar_lea.vmem %s526_s0, %s373_s21  ;;  %411 = vmatpush3.bf16.msra.mxu0 %v438_v3  ;;  %s172_s13 = scalar_lea.vmem %s529_s3, %s373_s21 }
  0x10   : > { %412 = vmatprep.subr.bf16.mxu0 %v453_v1  ;;  %v444_v9 = vld [vmem:[%s166_s24] sm:$0xff]  }
  0x13   : > { %413 = vmatpush3.bf16.msra.mxu0 %v439_v4 }
  0x14   : > { %414 = vmatprep.subr.bf16.mxu0 %v453_v1 }
  0x17   : > { %415 = vmatpush3.bf16.msra.mxu0 %v440_v5 }
  0x18   : > { %416 = vmatprep.subr.bf16.mxu0 %v453_v1 }
  0x1b   : > { %417 = vmatpush3.bf16.msra.mxu0 %v441_v6 }
  0x1c   : > { %418 = vmatprep.subr.bf16.mxu0 %v453_v1 }
  0x1f   : > { %419 = vmatpush3.bf16.msra.mxu0 %v442_v7 }
  0x20   : > { %420 = vmatprep.subr.bf16.mxu0 %v453_v1 }
  0x23   : > { %421 = vmatpush3.bf16.msra.mxu0 %v443_v8 }
  0x26   : > { %423 = vmatmul.mubr.bf16.vlgmr.msra.gmra.mrb[0].mxu0 %v444_v9 }
  0xf9   : > { %v288_v11 = vpop.f32.mrb[0].mxu0 }
  0xfa   : > { %v289_v12 = vadd.f32 %v376_v10, %v288_v11  ;;  %v424_v13 = vpop.f32.mrb[1].mxu0 }
  0xfb   : > { %v291_v14 = vpop.f32.mrb[2].mxu0 }
  0xfc   : > { %v297_v15 = vmul.f32 0.01, %v289_v12  ;;  %v292_v16 = vadd.f32 %v376_v10, %v291_v14  ;;  %v425_v17 = vpop.f32.mrb[3].mxu0  ;;  %vm295_vm1 = vcmp.ge.f32.partialorder %v289_v12, 0.0 }
  0xfe   : > { %vm296_vm2 = vcmp.ge.f32.partialorder %v292_v16, 0.0  ;;  %v298_v18 = vmul.f32 0.01, %v292_v16  ;;  %v299_v19 = vsel %vm295_vm1, %v289_v12, %v297_v15 }
 0x100   : > { %v300_v20 = vsel %vm296_vm2, %v292_v16, %v298_v18 }
 0x101   : > { %v395_v21 = vpack.c.bf16 %v300_v20, %v299_v19 }
 0x103   : > { %396 = vst [vmem:[%s172_s13] sm:$0xff] %v395_v21  }
 0x104 PF: > { %s13_s12 = sadd.s32 1, %s451_s12  }
 0x105   : > { %p10_p4 = scmp.ge.s32.totalorder %s13_s12, 4  }
 0x107   :  { %12 = sbr.rel (!%p10_p4) target bundleno = 1 (0x1), region = 62 }

// kernel: vanilla_vae_forward.8
= control target key start
LH: loop header
LB: loop body
LE: loop exit
PB: predicated region body
PF: predicated region fallthrough
CT: control target
= control target key end

     0   :  { %s626_s12 = smov 0   ;;  %s685_s0 = inlined_call_operand.vmem [shape: bf16[128,128], index: 0, kind: input, shape index: {}]   ;;  %s686_s1 = inlined_call_operand.vmem [shape: bf16[128,128], index: 1, kind: input, shape index: {}]   ;;  %s687_s2 = inlined_call_operand.vmem [shape: f32[1,128], index: 2, kind: input, shape index: {}]   ;;  %s688_s3 = inlined_call_operand.vmem [shape: bf16[128,128], index: 3, kind: output, shape index: {}]  }
   0x1 LB: > { %s463_s13 = sadd.s32 4294967295, %s604_s12   ;;  %p467_p0 = scmp.ge.s32.totalorder %s604_s12, 1  ;;  %s604_s12 = sphi %s626_s12, %s13_s12  }
   0x2   : > { %p138_p1 = scmp.lt.s32.totalorder %s604_s12, 3 }
   0x4   : > { %p139_p2 = pnand %p467_p0, %p138_p1 }
   0x5   : > { %v586_v0 = vld [vmem:[%s686_s1] sm:$0xff] (!%p139_p2)   ;;  %s468_s16 = sshll.u32 (!%p139_p2), %s463_s13, 3  ;;  %v587_v1 = vld [vmem:[%s686_s1 + $0x8] sm:$0xff] (!%p139_p2)   ;;  %v588_v2 = vld [vmem:[%s686_s1 + $0x10] sm:$0xff] (!%p139_p2)  }
   0x6   : > { %142 = sbr.rel (%p139_p2) target bundleno = 263 (0x107), region = 32  ;;  %p163_p3 = scmp.lt.s32.totalorder (!%p139_p2), %s468_s16, 15  ;;  %538 = vmatprep.subr.bf16.mxu0 (!%p139_p2), %v586_v0  ;;  %562 = vmatprep.subr.bf16.mxu1 (!%p139_p2), %v586_v0  ;;  %v589_v3 = vld [vmem:[%s686_s1 + $0x18] sm:$0xff] (!%p139_p2)   ;;  %v590_v6 = vld [vmem:[%s686_s1 + $0x20] sm:$0xff] (!%p139_p2)   ;;  %v591_v7 = vld [vmem:[%s686_s1 + $0x28] sm:$0xff] (!%p139_p2)  }
   0x7   : > { %539 = vmatpush3.bf16.msra.mxu0 (!%p139_p2), %v586_v0  ;;  %570 = vmatpush3.bf16.msra.mxu1 (!%p139_p2), %v586_v0  ;;  %v592_v8 = vld [vmem:[%s686_s1 + $0x30] sm:$0xff] (!%p139_p2)   ;;  %v593_v9 = vld [vmem:[%s686_s1 + $0x38] sm:$0xff] (!%p139_p2)   ;;  %v472_v12 = vld [vmem:[%s687_s2] ss:$0 sm:$0xff] (!%p139_p2) }
   0x8   : > { %540 = vmatprep.subr.bf16.mxu0 (!%p139_p2), %v587_v1  ;;  %563 = vmatprep.subr.bf16.mxu1 (!%p139_p2), %v587_v1 }
   0xb   : > { %541 = vmatpush3.bf16.msra.mxu0 (!%p139_p2), %v587_v1  ;;  %571 = vmatpush3.bf16.msra.mxu1 (!%p139_p2), %v587_v1 }
   0xc   : > { %542 = vmatprep.subr.bf16.mxu0 (!%p139_p2), %v588_v2  ;;  %564 = vmatprep.subr.bf16.mxu1 (!%p139_p2), %v588_v2 }
   0xd   : > { %s690_s16 = smov (!%p163_p3, %s468_s16), 15 }
   0xe   : > { %s469_s21 = sshll.u32 %s690_s16, 2 }
   0xf   : > { %s651_s24 = scalar_lea.vmem %s685_s0, %s469_s21  ;;  %543 = vmatpush3.bf16.msra.mxu0 %v588_v2  ;;  %572 = vmatpush3.bf16.msra.mxu1 %v588_v2  ;;  %s172_s13 = scalar_lea.vmem %s688_s3, %s469_s21 }
  0x10   : > { %v594_v4 = vld [vmem:[%s651_s24] sm:$0xff]   ;;  %v595_v5 = vld [vmem:[%s651_s24 + $0x10] sm:$0xff]   ;;  %544 = vmatprep.subr.bf16.mxu0 %v589_v3  ;;  %565 = vmatprep.subr.bf16.mxu1 %v589_v3  ;;  %v596_v10 = vld [vmem:[%s651_s24 + $0x8] sm:$0xff]  }
  0x11   : > { %554 = vmatprep.mubr.bf16.mxu0 %v594_v4  ;;  %558 = vmatprep.mubr.bf16.mxu1 %v595_v5  ;;  %v597_v11 = vld [vmem:[%s651_s24 + $0x18] sm:$0xff]  }
  0x13   : > { %545 = vmatpush3.bf16.msra.mxu0 %v589_v3  ;;  %573 = vmatpush3.bf16.msra.mxu1 %v589_v3 }
  0x14   : > { %546 = vmatprep.subr.bf16.mxu0 %v590_v6  ;;  %566 = vmatprep.subr.bf16.mxu1 %v590_v6 }
  0x17   : > { %547 = vmatpush3.bf16.msra.mxu0 %v590_v6  ;;  %574 = vmatpush3.bf16.msra.mxu1 %v590_v6 }
  0x18   : > { %548 = vmatprep.subr.bf16.mxu0 %v591_v7  ;;  %567 = vmatprep.subr.bf16.mxu1 %v591_v7 }
  0x1b   : > { %549 = vmatpush3.bf16.msra.mxu0 %v591_v7  ;;  %575 = vmatpush3.bf16.msra.mxu1 %v591_v7 }
  0x1c   : > { %550 = vmatprep.subr.bf16.mxu0 %v592_v8  ;;  %568 = vmatprep.subr.bf16.mxu1 %v592_v8 }
  0x1f   : > { %551 = vmatpush3.bf16.msra.mxu0 %v592_v8  ;;  %576 = vmatpush3.bf16.msra.mxu1 %v592_v8 }
  0x20   : > { %552 = vmatprep.subr.bf16.mxu0 %v593_v9  ;;  %569 = vmatprep.subr.bf16.mxu1 %v593_v9 }
  0x23   : > { %553 = vmatpush3.bf16.msra.mxu0 %v593_v9  ;;  %577 = vmatpush3.bf16.msra.mxu1 %v593_v9 }
  0x26   : > { %555 = vmatmul.mubr.bf16.vlgmr.msra.gmra.mrb[0].mxu0 %v596_v10  ;;  %559 = vmatmul.mubr.bf16.vlgmr.msra.gmra.mrb[0].mxu1 %v597_v11 }
  0xf9   : > { %v556_v13 = vpop.f32.mrb[0].mxu0  ;;  %v560_v14 = vpop.f32.mrb[0].mxu1 }
  0xfa   : > { %v321_v15 = vadd.f32 %v556_v13, %v472_v12  ;;  %v337_v16 = vadd.f32 %v560_v14, %v472_v12  ;;  %v312_v17 = vpop.f32.mrb[1].mxu0  ;;  %v328_v18 = vpop.f32.mrb[1].mxu1 }
  0xfb   : > { %v313_v19 = vadd.f32 %v472_v12, %v312_v17  ;;  %v329_v20 = vadd.f32 %v472_v12, %v328_v18  ;;  %v557_v21 = vpop.f32.mrb[2].mxu0  ;;  %v561_v22 = vpop.f32.mrb[2].mxu1 }
  0xfc   : > { %vm345_vm0 = vcmp.ge.f32.partialorder %v321_v15, 0.0  ;;  %v353_v23 = vmul.f32 0.01, %v321_v15  ;;  %vm349_vm1 = vcmp.ge.f32.partialorder %v337_v16, 0.0  ;;  %v357_v24 = vmul.f32 0.01, %v337_v16 }
  0xfd   : > { %vm343_vm2 = vcmp.ge.f32.partialorder %v313_v19, 0.0  ;;  %v351_v25 = vmul.f32 0.01, %v313_v19  ;;  %vm347_vm3 = vcmp.ge.f32.partialorder %v329_v20, 0.0  ;;  %v355_v26 = vmul.f32 0.01, %v329_v20 }
  0xfe   : > { %v324_v27 = vadd.f32 %v557_v21, %v472_v12  ;;  %v340_v28 = vadd.f32 %v561_v22, %v472_v12  ;;  %v315_v29 = vpop.f32.mrb[3].mxu0  ;;  %v331_v30 = vpop.f32.mrb[3].mxu1  ;;  %v361_v31 = vsel %vm345_vm0, %v321_v15, %v353_v23  ;;  %v365_v32 = vsel %vm349_vm1, %v337_v16, %v357_v24 }
  0xff   : > { %v316_v33 = vadd.f32 %v472_v12, %v315_v29  ;;  %v332_v34 = vadd.f32 %v472_v12, %v331_v30  ;;  %v359_v39 = vsel %vm343_vm2, %v313_v19, %v351_v25  ;;  %v363_v40 = vsel %vm347_vm3, %v329_v20, %v355_v26 }
 0x100   : > { %vm346_vm4 = vcmp.ge.f32.partialorder %v324_v27, 0.0  ;;  %v354_v35 = vmul.f32 0.01, %v324_v27  ;;  %vm350_vm5 = vcmp.ge.f32.partialorder %v340_v28, 0.0  ;;  %v358_v36 = vmul.f32 0.01, %v340_v28 }
 0x101   : > { %vm344_vm6 = vcmp.ge.f32.partialorder %v316_v33, 0.0  ;;  %v352_v37 = vmul.f32 0.01, %v316_v33  ;;  %vm348_vm7 = vcmp.ge.f32.partialorder %v332_v34, 0.0  ;;  %v356_v38 = vmul.f32 0.01, %v332_v34 }
 0x102   : > { %v362_v41 = vsel %vm346_vm4, %v324_v27, %v354_v35  ;;  %v366_v42 = vsel %vm350_vm5, %v340_v28, %v358_v36 }
 0x103   : > { %v511_v43 = vpack.c.bf16 %v362_v41, %v361_v31  ;;  %v521_v44 = vpack.c.bf16 %v366_v42, %v365_v32  ;;  %v360_v45 = vsel %vm344_vm6, %v316_v33, %v352_v37  ;;  %v364_v46 = vsel %vm348_vm7, %v332_v34, %v356_v38 }
 0x104   : > { %v506_v47 = vpack.c.bf16 %v360_v45, %v359_v39  ;;  %v516_v48 = vpack.c.bf16 %v364_v46, %v363_v40 }
 0x105   : > { %523 = vst [vmem:[%s172_s13 + $0x8] sm:$0xff] %v511_v43   ;;  %525 = vst [vmem:[%s172_s13 + $0x18] sm:$0xff] %v521_v44  }
 0x106   : > { %507 = vst [vmem:[%s172_s13] sm:$0xff] %v506_v47   ;;  %524 = vst [vmem:[%s172_s13 + $0x10] sm:$0xff] %v516_v48  }
 0x107 PF: > { %s13_s12 = sadd.s32 1, %s604_s12  }
 0x108   : > { %p10_p4 = scmp.ge.s32.totalorder %s13_s12, 4  }
 0x10a   :  { %12 = sbr.rel (!%p10_p4) target bundleno = 1 (0x1), region = 62 }

// kernel: vanilla_vae_forward.10
= control target key start
LH: loop header
LB: loop body
LE: loop exit
PB: predicated region body
PF: predicated region fallthrough
CT: control target
= control target key end

     0   :  { %s372_s1 = inlined_call_operand.vmem [shape: bf16[256,128], index: 1, kind: input, shape index: {}]   ;;  %s373_s0 = inlined_call_operand.vmem [shape: bf16[16,256], index: 0, kind: input, shape index: {}]   ;;  %s374_s2 = inlined_call_operand.vmem [shape: f32[1,128], index: 2, kind: input, shape index: {}]   ;;  %s375_s3 = inlined_call_operand.vmem [shape: bf16[16,128], index: 3, kind: output, shape index: {}]  }
   0x1   :  { %v273_v0 = vld [vmem:[%s372_s1 + $0x40] sm:$0xff]   ;;  %v275_v2 = vld [vmem:[%s372_s1 + $0x48] sm:$0xff]   ;;  %v277_v4 = vld [vmem:[%s372_s1 + $0x50] sm:$0xff]  }
   0x2   :  { %v274_v1 = vld [vmem:[%s372_s1] sm:$0xff]   ;;  %251 = vmatprep.subr.bf16.mxu0 %v273_v0  ;;  %v276_v3 = vld [vmem:[%s372_s1 + $0x8] sm:$0xff]   ;;  %v278_v5 = vld [vmem:[%s372_s1 + $0x10] sm:$0xff]  }
   0x3   :  { %252 = vmatpush3.bf16.msra.mxu0 %v274_v1  ;;  %v279_v6 = vld [vmem:[%s372_s1 + $0x58] sm:$0xff]   ;;  %v281_v8 = vld [vmem:[%s372_s1 + $0x60] sm:$0xff]   ;;  %v283_v10 = vld [vmem:[%s372_s1 + $0x68] sm:$0xff]  }
   0x4   :  { %253 = vmatprep.subr.bf16.mxu0 %v275_v2  ;;  %v280_v7 = vld [vmem:[%s372_s1 + $0x18] sm:$0xff]   ;;  %v282_v9 = vld [vmem:[%s372_s1 + $0x20] sm:$0xff]   ;;  %v284_v12 = vld [vmem:[%s372_s1 + $0x28] sm:$0xff]  }
   0x5   :  { %v291_v11 = vld [vmem:[%s373_s0 + $0x4] ss:$8 sps:$4 sm:$0xff]   ;;  %v285_v13 = vld [vmem:[%s372_s1 + $0x70] sm:$0xff]   ;;  %v287_v15 = vld [vmem:[%s372_s1 + $0x78] sm:$0xff]  }
   0x6   :  { %194 = vmatprep.mubr.bf16.mxu0 %v291_v11  ;;  %v286_v14 = vld [vmem:[%s372_s1 + $0x30] sm:$0xff]   ;;  %v288_v16 = vld [vmem:[%s372_s1 + $0x38] sm:$0xff]   ;;  %v289_v17 = vld [vmem:[%s373_s0] ss:$8 sps:$4 sm:$0xff]  }
   0x7   :  { %254 = vmatpush3.bf16.msra.mxu0 %v276_v3  ;;  %v223_v19 = vld [vmem:[%s374_s2] ss:$0 sm:$0xff] }
   0x8   :  { %255 = vmatprep.subr.bf16.mxu0 %v277_v4 }
   0xb   :  { %256 = vmatpush3.bf16.msra.mxu0 %v278_v5 }
   0xc   :  { %257 = vmatprep.subr.bf16.mxu0 %v279_v6 }
   0xf   :  { %258 = vmatpush3.bf16.msra.mxu0 %v280_v7 }
  0x10   :  { %259 = vmatprep.subr.bf16.mxu0 %v281_v8 }
  0x13   :  { %260 = vmatpush3.bf16.msra.mxu0 %v282_v9 }
  0x14   :  { %261 = vmatprep.subr.bf16.mxu0 %v283_v10 }
  0x17   :  { %262 = vmatpush3.bf16.msra.mxu0 %v284_v12 }
  0x18   :  { %263 = vmatprep.subr.bf16.mxu0 %v285_v13 }
  0x1b   :  { %264 = vmatpush3.bf16.msra.mxu0 %v286_v14 }
  0x1c   :  { %265 = vmatprep.subr.bf16.mxu0 %v287_v15 }
  0x1f   :  { %266 = vmatpush3.bf16.msra.mxu0 %v288_v16 }
  0x22   :  { %195 = vmatmul.mubr.bf16.vlgmr.msra.gmra.mrb[0].mxu0 %v289_v17 }
  0xf5   :  { %v267_v18 = vpop.f32.mrb[0].mxu0 }
  0xf6   :  { %v268_v20 = vpop.f32.mrb[1].mxu0 }
  0xf7   :  { %v269_v21 = vadd.f32 %v268_v20, %v267_v18  ;;  %v270_v22 = vpop.f32.mrb[2].mxu0 }
  0xf8   :  { %v271_v23 = vpop.f32.mrb[3].mxu0 }
  0xf9   :  { %v197_v24 = vadd.f32 %v269_v21, %v223_v19  ;;  %v272_v25 = vadd.f32 %v271_v23, %v270_v22 }
  0xfb   :  { %v205_v26 = vmul.f32 0.01, %v197_v24  ;;  %v200_v27 = vadd.f32 %v272_v25, %v223_v19  ;;  %vm203_vm0 = vcmp.ge.f32.partialorder %v197_v24, 0.0 }
  0xfd   :  { %vm204_vm1 = vcmp.ge.f32.partialorder %v200_v27, 0.0  ;;  %v206_v28 = vmul.f32 0.01, %v200_v27  ;;  %v207_v29 = vsel %vm203_vm0, %v197_v24, %v205_v26 }
  0xff   :  { %v208_v30 = vsel %vm204_vm1, %v200_v27, %v206_v28 }
 0x100   :  { %v249_v31 = vpack.c.bf16 %v208_v30, %v207_v29 }
 0x102   :  { %250 = vst [vmem:[%s375_s3] sm:$0xff] %v249_v31  }

// kernel: vanilla_vae_forward.11
= control target key start
LH: loop header
LB: loop body
LE: loop exit
PB: predicated region body
PF: predicated region fallthrough
CT: control target
= control target key end

     0   :  { %v448_v1 = vmov 0   ;;  %v449_v2 = vmov 0.0   ;;  %vm450_vm0 = vmmov 0   ;;  %v48_v27 = vlaneseq  ;;  %s609_s1 = inlined_call_operand.vmem [shape: bf16[128,256], index: 1, kind: input, shape index: {}]   ;;  %s610_s0 = inlined_call_operand.vmem [shape: bf16[16,128], index: 0, kind: input, shape index: {}]   ;;  %s611_s4 = inlined_call_operand.vmem [shape: bf16[128,128], index: 4, kind: input, shape index: {}]   ;;  %s612_s2 = inlined_call_operand.vmem [shape: f32[1,256], index: 2, kind: input, shape index: {}]   ;;  %s613_s6 = inlined_call_operand.vmem [shape: f32[16,128], index: 6, kind: output, shape index: {0}]   ;;  %s614_s7 = inlined_call_operand.vmem [shape: f32[16,128], index: 7, kind: output, shape index: {1}]   ;;  %s615_s3 = inlined_call_operand.vmem [shape: f32[16,128], index: 3, kind: input, shape index: {}]   ;;  %s616_s8 = inlined_call_operand.vmem [shape: f32[16,128], index: 8, kind: output, shape index: {2}]   ;;  %s617_s5 = inlined_call_operand.vmem [shape: f32[1,128], index: 5, kind: input, shape index: {}]   ;;  %s618_s9 = inlined_call_operand.vmem [shape: bf16[16,128], index: 9, kind: output, shape index: {3}]  }
   0x1   :  { %v411_v0 = vld [vmem:[%s609_s1 + $0x4] ss:$8 sps:$4 sm:$0xff]   ;;  %176 = vmatprep.mubr.bf16.mxu0 %v448_v1  ;;  %388 = vmatprep.subr.bf16.mxu1 %v449_v2  ;;  %v413_v3 = vld [vmem:[%s609_s1] ss:$8 sps:$4 sm:$0xff]   ;;  %v414_v4 = vld [vmem:[%s609_s1 + $0x14] ss:$8 sps:$4 sm:$0xff]  }
   0x2   :  { %144 = vmatprep.subr.bf16.mxu0 %v411_v0  ;;  %v416_v5 = vld [vmem:[%s609_s1 + $0x10] ss:$8 sps:$4 sm:$0xff]   ;;  %v417_v6 = vld [vmem:[%s609_s1 + $0x24] ss:$8 sps:$4 sm:$0xff]   ;;  %v419_v7 = vld [vmem:[%s609_s1 + $0x20] ss:$8 sps:$4 sm:$0xff]   ;;  %404 = vmatprep.mubr.msk.bf16.mxu1 %vm450_vm0, %v449_v2 }
   0x3   :  { %145 = vmatpush1.bf16.msra.mxu0 %v413_v3  ;;  %v420_v8 = vld [vmem:[%s609_s1 + $0x34] ss:$8 sps:$4 sm:$0xff]   ;;  %v422_v9 = vld [vmem:[%s609_s1 + $0x30] ss:$8 sps:$4 sm:$0xff]   ;;  %v423_v10 = vld [vmem:[%s609_s1 + $0x44] ss:$8 sps:$4 sm:$0xff]  }
   0x4   :  { %146 = vmatprep.subr.bf16.mxu0 %v414_v4  ;;  %v436_v11 = vld [vmem:[%s611_s4] sm:$0xff]   ;;  %v426_v13 = vld [vmem:[%s609_s1 + $0x54] ss:$8 sps:$4 sm:$0xff]   ;;  %v428_v14 = vld [vmem:[%s609_s1 + $0x50] ss:$8 sps:$4 sm:$0xff]   ;;  %v49_v28 = vshrl.u32 %v48_v27, 7 }
   0x5   :  { %v425_v12 = vld [vmem:[%s609_s1 + $0x40] ss:$8 sps:$4 sm:$0xff]   ;;  %389 = vmatpush3.bf16.msra.mxu1 %v436_v11  ;;  %v429_v15 = vld [vmem:[%s609_s1 + $0x64] ss:$8 sps:$4 sm:$0xff]   ;;  %v432_v17 = vld [vmem:[%s609_s1 + $0x74] ss:$8 sps:$4 sm:$0xff]  }
   0x6   :  { %390 = vmatprep.subr.bf16.mxu1 %v449_v2  ;;  %v431_v16 = vld [vmem:[%s609_s1 + $0x60] ss:$8 sps:$4 sm:$0xff]   ;;  %v434_v18 = vld [vmem:[%s609_s1 + $0x70] ss:$8 sps:$4 sm:$0xff]   ;;  %v50_v29 = vsub.s32 0, %v49_v28  ;;  %v54_v31 = vsub.s32 1, %v49_v28 }
   0x7   :  { %147 = vmatpush1.bf16.msra.mxu0 %v416_v5  ;;  %v435_v19 = vld [vmem:[%s610_s0] sm:$0xff]   ;;  %v437_v20 = vld [vmem:[%s611_s4 + $0x8] sm:$0xff]   ;;  %v438_v21 = vld [vmem:[%s611_s4 + $0x10] sm:$0xff]  }
   0x8   :  { %148 = vmatprep.subr.bf16.mxu0 %v417_v6  ;;  %v439_v22 = vld [vmem:[%s611_s4 + $0x18] sm:$0xff]   ;;  %v440_v23 = vld [vmem:[%s611_s4 + $0x20] sm:$0xff]   ;;  %v441_v24 = vld [vmem:[%s611_s4 + $0x28] sm:$0xff]  }
   0x9   :  { %391 = vmatpush3.bf16.msra.mxu1 %v437_v20  ;;  %v442_v25 = vld [vmem:[%s611_s4 + $0x30] sm:$0xff]   ;;  %v443_v26 = vld [vmem:[%s611_s4 + $0x38] sm:$0xff]   ;;  %v46_v30 = vld [vmem:[%s612_s2] sm:$0x3] }
   0xa   :  { %392 = vmatprep.subr.bf16.mxu1 %v449_v2  ;;  %v51_v32 = vrot.slane %v46_v30, %v50_v29  ;;  %v55_v33 = vrot.slane %v46_v30, %v54_v31  ;;  %v187_v46 = vld [vmem:[%s615_s3] sm:$0xff]  ;;  %v188_v48 = vld [vmem:[%s615_s3 + $0x8] sm:$0xff] }
   0xb   :  { %149 = vmatpush1.bf16.msra.mxu0 %v419_v7  ;;  %v361_v55 = vld [vmem:[%s617_s5] ss:$0 sm:$0xff] }
   0xc   :  { %150 = vmatprep.subr.bf16.mxu0 %v420_v8 }
   0xd   :  { %393 = vmatpush3.bf16.msra.mxu1 %v438_v21 }
   0xe   :  { %394 = vmatprep.subr.bf16.mxu1 %v449_v2 }
   0xf   :  { %151 = vmatpush1.bf16.msra.mxu0 %v422_v9 }
  0x10   :  { %152 = vmatprep.subr.bf16.mxu0 %v423_v10 }
  0x11   :  { %395 = vmatpush3.bf16.msra.mxu1 %v439_v22 }
  0x12   :  { %396 = vmatprep.subr.bf16.mxu1 %v449_v2 }
  0x13   :  { %153 = vmatpush1.bf16.msra.mxu0 %v425_v12 }
  0x14   :  { %154 = vmatprep.subr.bf16.mxu0 %v426_v13 }
  0x15   :  { %397 = vmatpush3.bf16.msra.mxu1 %v440_v23 }
  0x16   :  { %398 = vmatprep.subr.bf16.mxu1 %v449_v2 }
  0x17   :  { %155 = vmatpush1.bf16.msra.mxu0 %v428_v14 }
  0x18   :  { %156 = vmatprep.subr.bf16.mxu0 %v429_v15 }
  0x19   :  { %399 = vmatpush3.bf16.msra.mxu1 %v441_v24 }
  0x1a   :  { %400 = vmatprep.subr.bf16.mxu1 %v449_v2 }
  0x1b   :  { %157 = vmatpush1.bf16.msra.mxu0 %v431_v16 }
  0x1c   :  { %158 = vmatprep.subr.bf16.mxu0 %v432_v17 }
  0x1d   :  { %401 = vmatpush3.bf16.msra.mxu1 %v442_v25 }
  0x1e   :  { %402 = vmatprep.subr.bf16.mxu1 %v449_v2 }
  0x1f   :  { %159 = vmatpush1.bf16.msra.mxu0 %v434_v18 }
  0x21   :  { %403 = vmatpush3.bf16.msra.mxu1 %v443_v26 }
  0x22   :  { %177 = vmatmul.mubr.bf16.vlgmr.msra.gmra.mrb[0].mxu0 %v435_v19 }
  0xf5   :  { %v178_v34 = vpop.f32.mrb[0].mxu0 }
  0xf6   :  { %v179_v35 = vadd.f32 %v178_v34, %v51_v32  ;;  %v180_v36 = vpop.f32.mrb[1].mxu0 }
  0xf7   :  { %v181_v37 = vadd.f32 %v180_v36, %v55_v33  ;;  %v182_v38 = vpop.f32.mrb[2].mxu0 }
  0xf8   :  { %199 = vst [vmem:[%s613_s6] sm:$0xff] %v179_v35  ;;  %v183_v39 = vadd.f32 %v182_v38, %v51_v32  ;;  %v184_v40 = vpop.f32.mrb[3].mxu0 }
  0xf9   :  { %v189_v41 = vmul.f32 0.5, %v181_v37  ;;  %201 = vst [vmem:[%s614_s7] sm:$0xff] %v181_v37  ;;  %v185_v42 = vadd.f32 %v184_v40, %v55_v33 }
  0xfa   :  { %200 = vst [vmem:[%s613_s6 + $0x8] sm:$0xff] %v183_v39 }
  0xfb   :  { %v191_v43 = vmul.f32 1.442695, %v189_v41  ;;  %v190_v44 = vmul.f32 0.5, %v185_v42  ;;  %202 = vst [vmem:[%s614_s7 + $0x8] sm:$0xff] %v185_v42 }
  0xfd   :  { %444 = vpow2.f32 %v191_v43  ;;  %v193_v45 = vmul.f32 1.442695, %v190_v44 }
  0xff   :  { %446 = vpow2.f32 %v193_v45 }
 0x107   :  { %v445_v47 = vpop.eup %444 }
 0x108   :  { %v195_v49 = vmul.f32 %v445_v47, %v187_v46 }
 0x109   :  { %v447_v50 = vpop.eup %446 }
 0x10a   :  { %v196_v51 = vmul.f32 %v447_v50, %v188_v48  ;;  %v197_v52 = vadd.f32 %v195_v49, %v179_v35 }
 0x10c   :  { %v198_v53 = vadd.f32 %v196_v51, %v183_v39  ;;  %203 = vst [vmem:[%s616_s8] sm:$0xff] %v197_v52 }
 0x10e   :  { %204 = vst [vmem:[%s616_s8 + $0x8] sm:$0xff] %v198_v53  ;;  %v205_v54 = vpack.c.bf16 %v198_v53, %v197_v52 }
 0x110   :  { %405 = vmatmul.mubr.bf16.vlgmr.msra.gmra.mrb[0].mxu1 %v205_v54 }
 0x1e3   :  { %v311_v56 = vpop.f32.mrb[0].mxu1 }
 0x1e4   :  { %v406_v57 = vpop.f32.mrb[1].mxu1  ;;  %v312_v59 = vadd.f32 %v361_v55, %v311_v56 }
 0x1e5   :  { %v314_v58 = vpop.f32.mrb[2].mxu1 }
 0x1e6   :  { %v315_v60 = vadd.f32 %v361_v55, %v314_v58  ;;  %v407_v61 = vpop.f32.mrb[3].mxu1 }
 0x1e8   :  { %v377_v62 = vpack.c.bf16 %v315_v60, %v312_v59 }
 0x1ea   :  { %378 = vst [vmem:[%s618_s9] sm:$0xff] %v377_v62  }

// kernel: vanilla_vae_forward.12
= control target key start
LH: loop header
LB: loop body
LE: loop exit
PB: predicated region body
PF: predicated region fallthrough
CT: control target
= control target key end

     0   :  { %v214_v0 = vmov 0.0   ;;  %vm215_vm0 = vmmov 0   ;;  %s269_s1 = inlined_call_operand.vmem [shape: bf16[128,128], index: 1, kind: input, shape index: {}]   ;;  %s270_s0 = inlined_call_operand.vmem [shape: bf16[16,128], index: 0, kind: input, shape index: {}]   ;;  %s271_s2 = inlined_call_operand.vmem [shape: f32[1,128], index: 2, kind: input, shape index: {}]   ;;  %s272_s3 = inlined_call_operand.vmem [shape: bf16[16,128], index: 3, kind: output, shape index: {}]  }
   0x1   :  { %183 = vmatprep.subr.bf16.mxu0 %v214_v0  ;;  %v205_v1 = vld [vmem:[%s269_s1] sm:$0xff]   ;;  %199 = vmatprep.mubr.msk.bf16.mxu0 %vm215_vm0, %v214_v0  ;;  %v206_v2 = vld [vmem:[%s269_s1 + $0x8] sm:$0xff]   ;;  %v207_v3 = vld [vmem:[%s269_s1 + $0x10] sm:$0xff]  }
   0x2   :  { %184 = vmatpush3.bf16.msra.mxu0 %v205_v1  ;;  %v208_v4 = vld [vmem:[%s269_s1 + $0x18] sm:$0xff]   ;;  %v209_v5 = vld [vmem:[%s269_s1 + $0x20] sm:$0xff]   ;;  %v210_v6 = vld [vmem:[%s269_s1 + $0x28] sm:$0xff]  }
   0x3   :  { %185 = vmatprep.subr.bf16.mxu0 %v214_v0  ;;  %v211_v7 = vld [vmem:[%s269_s1 + $0x30] sm:$0xff]   ;;  %v212_v8 = vld [vmem:[%s269_s1 + $0x38] sm:$0xff]   ;;  %v213_v9 = vld [vmem:[%s270_s0] sm:$0xff]  }
   0x4   :  { %v155_v10 = vld [vmem:[%s271_s2] ss:$0 sm:$0xff] }
   0x6   :  { %186 = vmatpush3.bf16.msra.mxu0 %v206_v2 }
   0x7   :  { %187 = vmatprep.subr.bf16.mxu0 %v214_v0 }
   0xa   :  { %188 = vmatpush3.bf16.msra.mxu0 %v207_v3 }
   0xb   :  { %189 = vmatprep.subr.bf16.mxu0 %v214_v0 }
   0xe   :  { %190 = vmatpush3.bf16.msra.mxu0 %v208_v4 }
   0xf   :  { %191 = vmatprep.subr.bf16.mxu0 %v214_v0 }
  0x12   :  { %192 = vmatpush3.bf16.msra.mxu0 %v209_v5 }
  0x13   :  { %193 = vmatprep.subr.bf16.mxu0 %v214_v0 }
  0x16   :  { %194 = vmatpush3.bf16.msra.mxu0 %v210_v6 }
  0x17   :  { %195 = vmatprep.subr.bf16.mxu0 %v214_v0 }
  0x1a   :  { %196 = vmatpush3.bf16.msra.mxu0 %v211_v7 }
  0x1b   :  { %197 = vmatprep.subr.bf16.mxu0 %v214_v0 }
  0x1e   :  { %198 = vmatpush3.bf16.msra.mxu0 %v212_v8 }
  0x21   :  { %200 = vmatmul.mubr.bf16.vlgmr.msra.gmra.mrb[0].mxu0 %v213_v9 }
  0xf4   :  { %v128_v11 = vpop.f32.mrb[0].mxu0 }
  0xf5   :  { %v129_v12 = vadd.f32 %v155_v10, %v128_v11  ;;  %v201_v13 = vpop.f32.mrb[1].mxu0 }
  0xf6   :  { %v131_v14 = vpop.f32.mrb[2].mxu0 }
  0xf7   :  { %v137_v15 = vmul.f32 0.01, %v129_v12  ;;  %v132_v16 = vadd.f32 %v155_v10, %v131_v14  ;;  %v202_v17 = vpop.f32.mrb[3].mxu0  ;;  %vm135_vm1 = vcmp.ge.f32.partialorder %v129_v12, 0.0 }
  0xf9   :  { %vm136_vm2 = vcmp.ge.f32.partialorder %v132_v16, 0.0  ;;  %v138_v18 = vmul.f32 0.01, %v132_v16  ;;  %v139_v19 = vsel %vm135_vm1, %v129_v12, %v137_v15 }
  0xfb   :  { %v140_v20 = vsel %vm136_vm2, %v132_v16, %v138_v18 }
  0xfc   :  { %v172_v21 = vpack.c.bf16 %v140_v20, %v139_v19 }
  0xfe   :  { %173 = vst [vmem:[%s272_s3] sm:$0xff] %v172_v21  }

// kernel: vanilla_vae_forward.15
= control target key start
LH: loop header
LB: loop body
LE: loop exit
PB: predicated region body
PF: predicated region fallthrough
CT: control target
= control target key end

     0   :  { %s903_s12 = smov 0   ;;  %s1037_s0 = inlined_call_operand.vmem [shape: bf16[512,128], index: 0, kind: input, shape index: {}]   ;;  %s1038_s1 = inlined_call_operand.vmem [shape: bf16[128,128], index: 1, kind: input, shape index: {}]   ;;  %s1039_s2 = inlined_call_operand.vmem [shape: f32[1,128], index: 2, kind: input, shape index: {}]   ;;  %s1040_s3 = inlined_call_operand.vmem [shape: f32[512,128], index: 3, kind: output, shape index: {}]  }
   0x1 LB: > { %s655_s13 = sadd.s32 4294967295, %s881_s12   ;;  %p659_p0 = scmp.ge.s32.totalorder %s881_s12, 1  ;;  %s881_s12 = sphi %s903_s12, %s13_s12  }
   0x2   : > { %p138_p1 = scmp.lt.s32.totalorder %s881_s12, 3 }
   0x4   : > { %p139_p2 = pnand %p659_p0, %p138_p1 }
   0x5   : > { %v787_v0 = vld [vmem:[%s1038_s1] sm:$0xff] (!%p139_p2)   ;;  %s660_s16 = sshll.u32 (!%p139_p2), %s655_s13, 5  ;;  %v788_v1 = vld [vmem:[%s1038_s1 + $0x8] sm:$0xff] (!%p139_p2)   ;;  %v789_v2 = vld [vmem:[%s1038_s1 + $0x10] sm:$0xff] (!%p139_p2)  }
   0x6   : > { %142 = sbr.rel (%p139_p2) target bundleno = 298 (0x12a), region = 32  ;;  %p163_p3 = scmp.lt.s32.totalorder (!%p139_p2), %s660_s16, 63  ;;  %715 = vmatprep.subr.bf16.mxu0 (!%p139_p2), %v787_v0  ;;  %763 = vmatprep.subr.bf16.mxu1 (!%p139_p2), %v787_v0  ;;  %v790_v3 = vld [vmem:[%s1038_s1 + $0x18] sm:$0xff] (!%p139_p2)   ;;  %v791_v6 = vld [vmem:[%s1038_s1 + $0x20] sm:$0xff] (!%p139_p2)   ;;  %v792_v7 = vld [vmem:[%s1038_s1 + $0x28] sm:$0xff] (!%p139_p2)  }
   0x7   : > { %716 = vmatpush3.bf16.msra.mxu0 (!%p139_p2), %v787_v0  ;;  %771 = vmatpush3.bf16.msra.mxu1 (!%p139_p2), %v787_v0  ;;  %v793_v8 = vld [vmem:[%s1038_s1 + $0x30] sm:$0xff] (!%p139_p2)   ;;  %v794_v9 = vld [vmem:[%s1038_s1 + $0x38] sm:$0xff] (!%p139_p2)   ;;  %v962_v24 = vld [vmem:[%s1039_s2] ss:$0 sm:$0xff] (!%p139_p2) }
   0x8   : > { %717 = vmatprep.subr.bf16.mxu0 (!%p139_p2), %v788_v1  ;;  %764 = vmatprep.subr.bf16.mxu1 (!%p139_p2), %v788_v1 }
   0xb   : > { %718 = vmatpush3.bf16.msra.mxu0 (!%p139_p2), %v788_v1  ;;  %772 = vmatpush3.bf16.msra.mxu1 (!%p139_p2), %v788_v1 }
   0xc   : > { %719 = vmatprep.subr.bf16.mxu0 (!%p139_p2), %v789_v2  ;;  %765 = vmatprep.subr.bf16.mxu1 (!%p139_p2), %v789_v2 }
   0xd   : > { %s1042_s16 = smov (!%p163_p3, %s660_s16), 63 }
   0xe   : > { %s661_s21 = sshll.u32 %s1042_s16, 2  ;;  %s663_s10 = sshll.u32 %s1042_s16, 3 }
   0xf   : > { %s926_s24 = scalar_lea.vmem %s1037_s0, %s661_s21  ;;  %720 = vmatpush3.bf16.msra.mxu0 %v789_v2  ;;  %773 = vmatpush3.bf16.msra.mxu1 %v789_v2  ;;  %s980_s14 = scalar_lea.vmem %s1040_s3, %s663_s10 }
  0x10   : > { %v795_v4 = vld [vmem:[%s926_s24] sm:$0xff]   ;;  %721 = vmatprep.subr.bf16.mxu0 %v790_v3  ;;  %766 = vmatprep.subr.bf16.mxu1 %v790_v3  ;;  %v797_v10 = vld [vmem:[%s926_s24 + $0x8] sm:$0xff]   ;;  %v799_v12 = vld [vmem:[%s926_s24 + $0x10] sm:$0xff]  }
  0x11   : > { %v796_v5 = vld [vmem:[%s926_s24 + $0x40] sm:$0xff]   ;;  %731 = vmatprep.mubr.bf16.mxu0 %v795_v4  ;;  %v798_v11 = vld [vmem:[%s926_s24 + $0x48] sm:$0xff]   ;;  %v800_v13 = vld [vmem:[%s926_s24 + $0x50] sm:$0xff]  }
  0x12   : > { %747 = vmatprep.mubr.bf16.mxu1 %v796_v5  ;;  %v801_v14 = vld [vmem:[%s926_s24 + $0x18] sm:$0xff]   ;;  %v803_v16 = vld [vmem:[%s926_s24 + $0x20] sm:$0xff]   ;;  %v805_v18 = vld [vmem:[%s926_s24 + $0x28] sm:$0xff]  }
  0x13   : > { %722 = vmatpush3.bf16.msra.mxu0 %v790_v3  ;;  %774 = vmatpush3.bf16.msra.mxu1 %v790_v3  ;;  %v802_v15 = vld [vmem:[%s926_s24 + $0x58] sm:$0xff]   ;;  %v804_v17 = vld [vmem:[%s926_s24 + $0x60] sm:$0xff]   ;;  %v806_v19 = vld [vmem:[%s926_s24 + $0x68] sm:$0xff]  }
  0x14   : > { %723 = vmatprep.subr.bf16.mxu0 %v791_v6  ;;  %767 = vmatprep.subr.bf16.mxu1 %v791_v6  ;;  %v807_v20 = vld [vmem:[%s926_s24 + $0x30] sm:$0xff]   ;;  %v809_v22 = vld [vmem:[%s926_s24 + $0x38] sm:$0xff]  }
  0x15   : > { %v808_v21 = vld [vmem:[%s926_s24 + $0x70] sm:$0xff]   ;;  %v810_v23 = vld [vmem:[%s926_s24 + $0x78] sm:$0xff]  }
  0x17   : > { %724 = vmatpush3.bf16.msra.mxu0 %v791_v6  ;;  %775 = vmatpush3.bf16.msra.mxu1 %v791_v6 }
  0x18   : > { %725 = vmatprep.subr.bf16.mxu0 %v792_v7  ;;  %768 = vmatprep.subr.bf16.mxu1 %v792_v7 }
  0x1b   : > { %726 = vmatpush3.bf16.msra.mxu0 %v792_v7  ;;  %776 = vmatpush3.bf16.msra.mxu1 %v792_v7 }
  0x1c   : > { %727 = vmatprep.subr.bf16.mxu0 %v793_v8  ;;  %769 = vmatprep.subr.bf16.mxu1 %v793_v8 }
  0x1f   : > { %728 = vmatpush3.bf16.msra.mxu0 %v793_v8  ;;  %777 = vmatpush3.bf16.msra.mxu1 %v793_v8 }
  0x20   : > { %729 = vmatprep.subr.bf16.mxu0 %v794_v9  ;;  %770 = vmatprep.subr.bf16.mxu1 %v794_v9 }
  0x23   : > { %730 = vmatpush3.bf16.msra.mxu0 %v794_v9  ;;  %778 = vmatpush3.bf16.msra.mxu1 %v794_v9 }
  0x26   : > { %732 = vmatmul.mubr.bf16.vlgmr.msra.gmra.mrb[0].mxu0 %v797_v10  ;;  %748 = vmatmul.mubr.bf16.vlgmr.msra.gmra.mrb[0].mxu1 %v798_v11 }
  0x27   : > { %735 = vmatprep.mubr.bf16.mxu0 %v799_v12  ;;  %751 = vmatprep.mubr.bf16.mxu1 %v800_v13 }
  0x2e   : > { %736 = vmatmul.mubr.bf16.gmra.mrb[4].mxu0 %v801_v14  ;;  %752 = vmatmul.mubr.bf16.gmra.mrb[4].mxu1 %v802_v15 }
  0x2f   : > { %739 = vmatprep.mubr.bf16.mxu0 %v803_v16  ;;  %755 = vmatprep.mubr.bf16.mxu1 %v804_v17 }
  0x36   : > { %740 = vmatmul.mubr.bf16.gmra.mrb[8].mxu0 %v805_v18  ;;  %756 = vmatmul.mubr.bf16.gmra.mrb[8].mxu1 %v806_v19 }
  0x37   : > { %743 = vmatprep.mubr.bf16.mxu0 %v807_v20  ;;  %759 = vmatprep.mubr.bf16.mxu1 %v808_v21 }
  0x3e   : > { %744 = vmatmul.mubr.bf16.gmra.mrb[12].mxu0 %v809_v22  ;;  %760 = vmatmul.mubr.bf16.gmra.mrb[12].mxu1 %v810_v23 }
  0xf9   : > { %v733_v25 = vpop.f32.mrb[0].mxu0  ;;  %v749_v26 = vpop.f32.mrb[0].mxu1 }
  0xfa   : > { %v417_v27 = vadd.f32 %v733_v25, %v962_v24  ;;  %v481_v28 = vadd.f32 %v749_v26, %v962_v24  ;;  %v408_v29 = vpop.f32.mrb[1].mxu0  ;;  %v472_v30 = vpop.f32.mrb[1].mxu1 }
  0xfb   : > { %v409_v31 = vadd.f32 %v962_v24, %v408_v29  ;;  %v473_v32 = vadd.f32 %v962_v24, %v472_v30  ;;  %v734_v33 = vpop.f32.mrb[2].mxu0  ;;  %v750_v34 = vpop.f32.mrb[2].mxu1 }
  0xfc   : > { %811 = vtanh.f32 %v417_v27  ;;  %v420_v35 = vadd.f32 %v734_v33, %v962_v24  ;;  %v411_v36 = vpop.f32.mrb[3].mxu0  ;;  %v475_v37 = vpop.f32.mrb[3].mxu1  ;;  %v484_v38 = vadd.f32 %v750_v34, %v962_v24 }
  0xfd   : > { %813 = vtanh.f32 %v481_v28  ;;  %v412_v39 = vadd.f32 %v962_v24, %v411_v36  ;;  %v476_v40 = vadd.f32 %v962_v24, %v475_v37 }
  0xfe   : > { %815 = vtanh.f32 %v409_v31 }
  0xff   : > { %817 = vtanh.f32 %v473_v32 }
 0x100   : > { %819 = vtanh.f32 %v420_v35 }
 0x101   : > { %821 = vtanh.f32 %v484_v38  ;;  %v737_v41 = vpop.f32.mrb[4].mxu0  ;;  %v753_v42 = vpop.f32.mrb[4].mxu1 }
 0x102   : > { %823 = vtanh.f32 %v412_v39  ;;  %v433_v43 = vadd.f32 %v737_v41, %v962_v24  ;;  %v497_v44 = vadd.f32 %v753_v42, %v962_v24  ;;  %v424_v45 = vpop.f32.mrb[5].mxu0  ;;  %v488_v46 = vpop.f32.mrb[5].mxu1 }
 0x103   : > { %825 = vtanh.f32 %v476_v40  ;;  %v425_v47 = vadd.f32 %v962_v24, %v424_v45  ;;  %v489_v48 = vadd.f32 %v962_v24, %v488_v46  ;;  %v738_v49 = vpop.f32.mrb[6].mxu0  ;;  %v754_v50 = vpop.f32.mrb[6].mxu1 }
 0x104   : > { %827 = vtanh.f32 %v433_v43  ;;  %v436_v51 = vadd.f32 %v738_v49, %v962_v24  ;;  %v427_v52 = vpop.f32.mrb[7].mxu0  ;;  %v491_v53 = vpop.f32.mrb[7].mxu1  ;;  %v500_v54 = vadd.f32 %v754_v50, %v962_v24 }
 0x105   : > { %829 = vtanh.f32 %v497_v44  ;;  %v428_v56 = vadd.f32 %v962_v24, %v427_v52  ;;  %v492_v58 = vadd.f32 %v962_v24, %v491_v53 }
 0x106   : > { %v812_v55 = vpop.eup %811  ;;  %831 = vtanh.f32 %v425_v47 }
 0x107   : > { %v814_v57 = vpop.eup %813  ;;  %569 = vst [vmem:[%s980_s14 + $0x10] sm:$0xff] %v812_v55  ;;  %833 = vtanh.f32 %v489_v48 }
 0x108   : > { %v816_v59 = vpop.eup %815  ;;  %585 = vst [vmem:[%s980_s14 + $0x90] sm:$0xff] %v814_v57  ;;  %835 = vtanh.f32 %v436_v51 }
 0x109   : > { %v818_v60 = vpop.eup %817  ;;  %567 = vst [vmem:[%s980_s14] sm:$0xff] %v816_v59  ;;  %837 = vtanh.f32 %v500_v54  ;;  %v741_v61 = vpop.f32.mrb[8].mxu0 }
 0x10a   : > { %v757_v62 = vpop.f32.mrb[8].mxu1  ;;  %v820_v63 = vpop.eup %819  ;;  %583 = vst [vmem:[%s980_s14 + $0x80] sm:$0xff] %v818_v60  ;;  %839 = vtanh.f32 %v428_v56  ;;  %v449_v0 = vadd.f32 %v741_v61, %v962_v24 }
 0x10b   : > { %v513_v1 = vadd.f32 %v757_v62, %v962_v24  ;;  %v440_v2 = vpop.f32.mrb[9].mxu0  ;;  %v504_v3 = vpop.f32.mrb[9].mxu1  ;;  %570 = vst [vmem:[%s980_s14 + $0x18] sm:$0xff] %v820_v63  ;;  %841 = vtanh.f32 %v492_v58 }
 0x10c   : > { %v822_v4 = vpop.eup %821  ;;  %v441_v5 = vadd.f32 %v962_v24, %v440_v2  ;;  %v505_v6 = vadd.f32 %v962_v24, %v504_v3  ;;  %v742_v7 = vpop.f32.mrb[10].mxu0  ;;  %843 = vtanh.f32 %v449_v0 }
 0x10d   : > { %v758_v8 = vpop.f32.mrb[10].mxu1  ;;  %v824_v9 = vpop.eup %823  ;;  %586 = vst [vmem:[%s980_s14 + $0x98] sm:$0xff] %v822_v4  ;;  %v452_v10 = vadd.f32 %v742_v7, %v962_v24  ;;  %845 = vtanh.f32 %v513_v1 }
 0x10e   : > { %v443_v11 = vpop.f32.mrb[11].mxu0  ;;  %v507_v12 = vpop.f32.mrb[11].mxu1  ;;  %568 = vst [vmem:[%s980_s14 + $0x8] sm:$0xff] %v824_v9  ;;  %v516_v14 = vadd.f32 %v758_v8, %v962_v24  ;;  %847 = vtanh.f32 %v441_v5 }
 0x10f   : > { %v826_v13 = vpop.eup %825  ;;  %v444_v16 = vadd.f32 %v962_v24, %v443_v11  ;;  %849 = vtanh.f32 %v505_v6  ;;  %v508_v18 = vadd.f32 %v962_v24, %v507_v12 }
 0x110   : > { %v828_v15 = vpop.eup %827  ;;  %584 = vst [vmem:[%s980_s14 + $0x88] sm:$0xff] %v826_v13  ;;  %851 = vtanh.f32 %v452_v10 }
 0x111   : > { %v830_v17 = vpop.eup %829  ;;  %573 = vst [vmem:[%s980_s14 + $0x30] sm:$0xff] %v828_v15  ;;  %853 = vtanh.f32 %v516_v14  ;;  %v745_v21 = vpop.f32.mrb[12].mxu0 }
 0x112   : > { %v832_v19 = vpop.eup %831  ;;  %589 = vst [vmem:[%s980_s14 + $0xb0] sm:$0xff] %v830_v17  ;;  %v761_v22 = vpop.f32.mrb[12].mxu1  ;;  %855 = vtanh.f32 %v444_v16  ;;  %v465_v25 = vadd.f32 %v745_v21, %v962_v24 }
 0x113   : > { %v834_v20 = vpop.eup %833  ;;  %571 = vst [vmem:[%s980_s14 + $0x20] sm:$0xff] %v832_v19  ;;  %v529_v26 = vadd.f32 %v761_v22, %v962_v24  ;;  %v456_v27 = vpop.f32.mrb[13].mxu0  ;;  %857 = vtanh.f32 %v508_v18 }
 0x114   : > { %v836_v23 = vpop.eup %835  ;;  %587 = vst [vmem:[%s980_s14 + $0xa0] sm:$0xff] %v834_v20  ;;  %v520_v28 = vpop.f32.mrb[13].mxu1  ;;  %v457_v30 = vadd.f32 %v962_v24, %v456_v27  ;;  %859 = vtanh.f32 %v465_v25 }
 0x115   : > { %v838_v29 = vpop.eup %837  ;;  %574 = vst [vmem:[%s980_s14 + $0x38] sm:$0xff] %v836_v23  ;;  %v521_v31 = vadd.f32 %v962_v24, %v520_v28  ;;  %v746_v32 = vpop.f32.mrb[14].mxu0  ;;  %861 = vtanh.f32 %v529_v26 }
 0x116   : > { %v762_v33 = vpop.f32.mrb[14].mxu1  ;;  %v840_v34 = vpop.eup %839  ;;  %590 = vst [vmem:[%s980_s14 + $0xb8] sm:$0xff] %v838_v29  ;;  %v468_v35 = vadd.f32 %v746_v32, %v962_v24  ;;  %863 = vtanh.f32 %v457_v30 }
 0x117   : > { %v459_v36 = vpop.f32.mrb[15].mxu0  ;;  %v523_v37 = vpop.f32.mrb[15].mxu1  ;;  %572 = vst [vmem:[%s980_s14 + $0x28] sm:$0xff] %v840_v34  ;;  %v532_v39 = vadd.f32 %v762_v33, %v962_v24  ;;  %865 = vtanh.f32 %v521_v31 }
 0x118   : > { %v842_v38 = vpop.eup %841  ;;  %v460_v41 = vadd.f32 %v962_v24, %v459_v36  ;;  %v524_v43 = vadd.f32 %v962_v24, %v523_v37  ;;  %867 = vtanh.f32 %v468_v35 }
 0x119   : > { %v844_v40 = vpop.eup %843  ;;  %588 = vst [vmem:[%s980_s14 + $0xa8] sm:$0xff] %v842_v38  ;;  %869 = vtanh.f32 %v532_v39 }
 0x11a   : > { %v846_v42 = vpop.eup %845  ;;  %577 = vst [vmem:[%s980_s14 + $0x50] sm:$0xff] %v844_v40  ;;  %871 = vtanh.f32 %v460_v41 }
 0x11b   : > { %v848_v44 = vpop.eup %847  ;;  %593 = vst [vmem:[%s980_s14 + $0xd0] sm:$0xff] %v846_v42  ;;  %873 = vtanh.f32 %v524_v43 }
 0x11c   : > { %v850_v45 = vpop.eup %849  ;;  %575 = vst [vmem:[%s980_s14 + $0x40] sm:$0xff] %v848_v44 }
 0x11d   : > { %v852_v46 = vpop.eup %851  ;;  %591 = vst [vmem:[%s980_s14 + $0xc0] sm:$0xff] %v850_v45 }
 0x11e   : > { %v854_v47 = vpop.eup %853  ;;  %578 = vst [vmem:[%s980_s14 + $0x58] sm:$0xff] %v852_v46 }
 0x11f   : > { %v856_v24 = vpop.eup %855  ;;  %594 = vst [vmem:[%s980_s14 + $0xd8] sm:$0xff] %v854_v47 }
 0x120   : > { %v858_v48 = vpop.eup %857  ;;  %576 = vst [vmem:[%s980_s14 + $0x48] sm:$0xff] %v856_v24 }
 0x121   : > { %v860_v49 = vpop.eup %859  ;;  %592 = vst [vmem:[%s980_s14 + $0xc8] sm:$0xff] %v858_v48 }
 0x122   : > { %v862_v50 = vpop.eup %861  ;;  %581 = vst [vmem:[%s980_s14 + $0x70] sm:$0xff] %v860_v49 }
 0x123   : > { %v864_v51 = vpop.eup %863  ;;  %597 = vst [vmem:[%s980_s14 + $0xf0] sm:$0xff] %v862_v50 }
 0x124   : > { %v866_v52 = vpop.eup %865  ;;  %579 = vst [vmem:[%s980_s14 + $0x60] sm:$0xff] %v864_v51 }
 0x125   : > { %v868_v53 = vpop.eup %867  ;;  %595 = vst [vmem:[%s980_s14 + $0xe0] sm:$0xff] %v866_v52 }
 0x126   : > { %v870_v54 = vpop.eup %869  ;;  %582 = vst [vmem:[%s980_s14 + $0x78] sm:$0xff] %v868_v53 }
 0x127   : > { %v872_v55 = vpop.eup %871  ;;  %598 = vst [vmem:[%s980_s14 + $0xf8] sm:$0xff] %v870_v54 }
 0x128   : > { %v874_v56 = vpop.eup %873  ;;  %580 = vst [vmem:[%s980_s14 + $0x68] sm:$0xff] %v872_v55 }
 0x129   : > { %596 = vst [vmem:[%s980_s14 + $0xe8] sm:$0xff] %v874_v56 }
 0x12a PF: > { %s13_s12 = sadd.s32 1, %s881_s12  }
 0x12b   : > { %p10_p4 = scmp.ge.s32.totalorder %s13_s12, 4  }
 0x12d   :  { %12 = sbr.rel (!%p10_p4) target bundleno = 1 (0x1), region = 62 }

</bundles_post_ra>
